<compile_context>
chip_gen: v5e
topology: v5e:2x2
jax: 0.10.0
libtpu: 0.0.40
codegen_flags: <defaults>
</compile_context>

<pallas_src>
import functools

import jax
import jax.numpy as jnp
from jax.experimental import pallas as pl
from jax.experimental.pallas import tpu as pltpu

EPS = 1e-5  # nn.LayerNorm default eps


def _layernorm(x, g, b):
    mu = jnp.mean(x, axis=-1, keepdims=True)
    xc = x - mu
    var = jnp.mean(xc * xc, axis=-1, keepdims=True)
    return xc * jax.lax.rsqrt(var + EPS) * g + b


def cross_domain_attn_kernel(num_heads,
                             a_ref, b_ref,
                             wq_ref, bq_ref,
                             wkv_ref, bkv_ref,
                             wo_ref, bo_ref,
                             g1_ref, beta1_ref,
                             w1_ref, b1_ref,
                             w2_ref, b2_ref,
                             g2_ref, beta2_ref,
                             out_ref):
    La, N, E = a_ref.shape
    Lb = b_ref.shape[0]
    H = num_heads
    hd = E // H

    # (seq, batch, E) -> batch-major row slabs. This rearrangement is VMEM-local
    # (no extra HBM read/write passes like a wrapper-side jnp.transpose would cost).
    A2 = jnp.transpose(a_ref[...], (1, 0, 2)).reshape(N * La, E)   # (N*La, E)
    B2 = jnp.transpose(b_ref[...], (1, 0, 2)).reshape(N * Lb, E)   # (N*Lb, E)

    # Row-wise projections on the batch-folded slabs (better MXU M-dim fill).
    # 1/sqrt(hd) is pre-folded into wq/bq in the wrapper; K and V share one fused matmul.
    Q = jnp.dot(A2, wq_ref[...], preferred_element_type=jnp.float32) + bq_ref[...]
    KV = jnp.dot(B2, wkv_ref[...], preferred_element_type=jnp.float32) + bkv_ref[...]
    K = KV[:, :E]
    V = KV[:, E:]

    Qh = Q.reshape(N * La, H, hd)
    Kh = K.reshape(N * Lb, H, hd)
    Vh = V.reshape(N * Lb, H, hd)

    # Head-batched attention; the small static batch dim is unrolled (for large N this
    # would become a "parallel" grid axis instead).
    ctx_parts = []
    for n in range(N):
        qn = Qh[n * La:(n + 1) * La]            # (La, H, hd)
        kn = Kh[n * Lb:(n + 1) * Lb]            # (Lb, H, hd)
        vn = Vh[n * Lb:(n + 1) * Lb]            # (Lb, H, hd)
        s = jnp.einsum('qhd,khd->hqk', qn, kn,
                       preferred_element_type=jnp.float32)        # (H, La, Lb)
        s = s - jnp.max(s, axis=-1, keepdims=True)
        p = jnp.exp(s)
        p = p * pl.reciprocal(jnp.sum(p, axis=-1, keepdims=True), approx=True)
        ctx_parts.append(jnp.einsum('hqk,khd->qhd', p, vn,
                                    preferred_element_type=jnp.float32))  # (La, H, hd)
    ctx = jnp.concatenate(ctx_parts, axis=0).reshape(N * La, E)    # (N*La, E)

    attn = jnp.dot(ctx, wo_ref[...], preferred_element_type=jnp.float32) + bo_ref[...]

    # residual + LayerNorm 1   (dropout == identity in eval mode)
    A_prime = _layernorm(A2 + attn, g1_ref[...], beta1_ref[...])

    # FFN: Linear -> ReLU -> (Dropout=id) -> Linear, again on batch-folded rows
    h1 = jnp.dot(A_prime, w1_ref[...], preferred_element_type=jnp.float32) + b1_ref[...]
    h1 = jnp.maximum(h1, 0.0)
    ffn = jnp.dot(h1, w2_ref[...], preferred_element_type=jnp.float32) + b2_ref[...]

    # residual + LayerNorm 2, then back to the PyTorch (seq, batch, E) layout
    out2 = _layernorm(A_prime + ffn, g2_ref[...], beta2_ref[...])
    out_ref[...] = jnp.transpose(out2.reshape(N, La, E), (1, 0, 2))


def cross_domain_attention(A, B, params, num_heads):
    """A: (La, N, E), B: (Lb, N, E) in PyTorch layout. Returns (La, N, E)."""
    La, N, E = A.shape
    Lb = B.shape[0]
    F = params["w1"].shape[1]
    hd = E // num_heads
    scale = 1.0 / (hd ** 0.5)

    # One-time parameter prep (outside the kernel): fold the attention scale into the
    # Q projection and fuse the K / V projections into a single (E, 2E) weight.
    wq = params["wq"] * scale
    bq = params["bq"] * scale
    wkv = jnp.concatenate([params["wk"], params["wv"]], axis=1)    # (E, 2E)
    bkv = jnp.concatenate([params["bk"], params["bv"]], axis=1)    # (1, 2E)

    def full_spec(shape):
        nd = len(shape)
        return pl.BlockSpec(shape, lambda i, _nd=nd: (0,) * _nd)

    in_specs = [
        full_spec((La, N, E)), full_spec((Lb, N, E)),
        full_spec((E, E)), full_spec((1, E)),
        full_spec((E, 2 * E)), full_spec((1, 2 * E)),
        full_spec((E, E)), full_spec((1, E)),
        full_spec((1, E)), full_spec((1, E)),
        full_spec((E, F)), full_spec((1, F)),
        full_spec((F, E)), full_spec((1, E)),
        full_spec((1, E)), full_spec((1, E)),
    ]

    # Single grid step: the whole (small) problem lives in VMEM, weights are resident
    # once and there is no per-step pipeline overhead.
    # TODO(synk): for production-scale shapes, add a "parallel" row-tile grid axis over
    # (batch, La), single-buffer the constant weight specs, tile the FFN over F blocks,
    # and use bf16 matmul operands with f32 accumulation (kept f32 here so the strict
    # f32 reference check below stays meaningful).
    return pl.pallas_call(
        functools.partial(cross_domain_attn_kernel, num_heads),
        out_shape=jax.ShapeDtypeStruct((La, N, E), jnp.float32),
        grid=(1,),
        in_specs=in_specs,
        out_specs=full_spec((La, N, E)),
        compiler_params=pltpu.CompilerParams(dimension_semantics=("arbitrary",)),
    )(A, B, wq, bq, wkv, bkv,
      params["wo"], params["bo"],
      params["g1"], params["beta1"],
      params["w1"], params["b1"],
      params["w2"], params["b2"],
      params["g2"], params["beta2"])


def init_params(key, embed_dim, num_heads, ff_dim):
    """Deterministic synthetic parameters matching nn.MultiheadAttention / Linear / LayerNorm shapes."""
    ks = jax.random.split(key, 8)
    E, F = embed_dim, ff_dim
    in_proj_w = jax.random.normal(ks[0], (3 * E, E), jnp.float32) * 0.05   # (3E, E)
    in_proj_b = jax.random.normal(ks[1], (3 * E,), jnp.float32) * 0.05
    out_w = jax.random.normal(ks[2], (E, E), jnp.float32) * 0.05           # out_proj: (E, E)
    out_b = jax.random.normal(ks[3], (E,), jnp.float32) * 0.05
    lin1_w = jax.random.normal(ks[4], (F, E), jnp.float32) * 0.05          # Linear(E, F): (F, E)
    lin1_b = jax.random.normal(ks[5], (F,), jnp.float32) * 0.05
    lin2_w = jax.random.normal(ks[6], (E, F), jnp.float32) * 0.05          # Linear(F, E): (E, F)
    lin2_b = jax.random.normal(ks[7], (E,), jnp.float32) * 0.05

    # Pre-transpose weights to (in, out) and reshape biases to (1, out) for the kernel.
    return {
        "wq": in_proj_w[:E].T, "wk": in_proj_w[E:2 * E].T, "wv": in_proj_w[2 * E:].T,
        "bq": in_proj_b[:E].reshape(1, E),
        "bk": in_proj_b[E:2 * E].reshape(1, E),
        "bv": in_proj_b[2 * E:].reshape(1, E),
        "wo": out_w.T, "bo": out_b.reshape(1, E),
        "g1": jnp.ones((1, E), jnp.float32), "beta1": jnp.zeros((1, E), jnp.float32),
        "w1": lin1_w.T, "b1": lin1_b.reshape(1, F),
        "w2": lin2_w.T, "b2": lin2_b.reshape(1, E),
        "g2": jnp.ones((1, E), jnp.float32), "beta2": jnp.zeros((1, E), jnp.float32),
    }


def reference_forward(A, B, p, num_heads):
    """Pure-JAX reference of the PyTorch forward (eval mode) for verification."""
    La, N, E = A.shape
    hd = E // num_heads
    scale = 1.0 / (hd ** 0.5)

    def per_batch(a, b):  # a: (La, E), b: (Lb, E)
        Q = a @ p["wq"] + p["bq"][0]
        K = b @ p["wk"] + p["bk"][0]
        V = b @ p["wv"] + p["bv"][0]
        outs = []
        for h in range(num_heads):
            qh, kh, vh = (X[:, h * hd:(h + 1) * hd] for X in (Q, K, V))
            s = (qh @ kh.T) * scale
            pmat = jax.nn.softmax(s, axis=-1)
            outs.append(pmat @ vh)
        ctx = jnp.concatenate(outs, axis=-1)
        attn = ctx @ p["wo"] + p["bo"][0]

        def ln(x, g, bb):
            mu = x.mean(-1, keepdims=True)
            var = ((x - mu) ** 2).mean(-1, keepdims=True)
            return (x - mu) / jnp.sqrt(var + EPS) * g + bb

        a1 = ln(a + attn, p["g1"][0], p["beta1"][0])
        f = jnp.maximum(a1 @ p["w1"] + p["b1"][0], 0.0) @ p["w2"] + p["b2"][0]
        return ln(a1 + f, p["g2"][0], p["beta2"][0])

    Ab = jnp.transpose(A, (1, 0, 2))
    Bb = jnp.transpose(B, (1, 0, 2))
    out = jax.vmap(per_batch)(Ab, Bb)
    return jnp.transpose(out, (1, 0, 2))


if __name__ == "__main__":
    embed_dim, num_heads, ff_dim = 32, 4, 64
    seq_a, seq_b, batch = 8, 8, 2

    key = jax.random.PRNGKey(0)
    ka, kb, kp = jax.random.split(key, 3)
    A = jax.random.normal(ka, (seq_a, batch, embed_dim), jnp.float32)
    B = jax.random.normal(kb, (seq_b, batch, embed_dim), jnp.float32)
    params = init_params(kp, embed_dim, num_heads, ff_dim)

    out = cross_domain_attention(A, B, params, num_heads)
    out = jax.block_until_ready(out)

    ref = reference_forward(A, B, params, num_heads)
    assert out.shape == (seq_a, batch, embed_dim)
    # Tolerance slightly relaxed vs. the pure-f32 reference because the softmax
    # denominator uses the EUP approximate reciprocal (pl.reciprocal(approx=True)).
    assert jnp.allclose(out, ref, atol=2e-3, rtol=2e-3), "mismatch vs pure-JAX reference"

    print("KERNEL_OK")
</pallas_src>

<mosaic_0001>
module attributes {stable_mosaic.version = 11 : i64} {
  func.func @cross_domain_attn_kernel(%arg0: i32, %arg1: memref<8x2x32xf32, #tpu.memory_space<vmem>>, %arg2: memref<8x2x32xf32, #tpu.memory_space<vmem>>, %arg3: memref<32x32xf32, #tpu.memory_space<vmem>>, %arg4: memref<1x32xf32, #tpu.memory_space<vmem>>, %arg5: memref<32x64xf32, #tpu.memory_space<vmem>>, %arg6: memref<1x64xf32, #tpu.memory_space<vmem>>, %arg7: memref<32x32xf32, #tpu.memory_space<vmem>>, %arg8: memref<1x32xf32, #tpu.memory_space<vmem>>, %arg9: memref<1x32xf32, #tpu.memory_space<vmem>>, %arg10: memref<1x32xf32, #tpu.memory_space<vmem>>, %arg11: memref<32x64xf32, #tpu.memory_space<vmem>>, %arg12: memref<1x64xf32, #tpu.memory_space<vmem>>, %arg13: memref<64x32xf32, #tpu.memory_space<vmem>>, %arg14: memref<1x32xf32, #tpu.memory_space<vmem>>, %arg15: memref<1x32xf32, #tpu.memory_space<vmem>>, %arg16: memref<1x32xf32, #tpu.memory_space<vmem>>, %arg17: memref<8x2x32xf32, #tpu.memory_space<vmem>>) attributes {dimension_semantics = [#tpu.dimension_semantics<arbitrary>], iteration_bounds = array<i64: 1>, scalar_prefetch = 0 : i64, scratch_operands = 0 : i64, tpu.core_type = #tpu.core_type<tc>, window_params = [{pipeline_mode = #tpu.pipeline_mode<synchronous>, transform_indices = @transform_0, window_bounds = array<i64: 8, 2, 32>}, {pipeline_mode = #tpu.pipeline_mode<synchronous>, transform_indices = @transform_1, window_bounds = array<i64: 8, 2, 32>}, {pipeline_mode = #tpu.pipeline_mode<synchronous>, transform_indices = @transform_2, window_bounds = array<i64: 32, 32>}, {pipeline_mode = #tpu.pipeline_mode<synchronous>, transform_indices = @transform_3, window_bounds = array<i64: 1, 32>}, {pipeline_mode = #tpu.pipeline_mode<synchronous>, transform_indices = @transform_4, window_bounds = array<i64: 32, 64>}, {pipeline_mode = #tpu.pipeline_mode<synchronous>, transform_indices = @transform_5, window_bounds = array<i64: 1, 64>}, {pipeline_mode = #tpu.pipeline_mode<synchronous>, transform_indices = @transform_6, window_bounds = array<i64: 32, 32>}, {pipeline_mode = #tpu.pipeline_mode<synchronous>, transform_indices = @transform_7, window_bounds = array<i64: 1, 32>}, {pipeline_mode = #tpu.pipeline_mode<synchronous>, transform_indices = @transform_8, window_bounds = array<i64: 1, 32>}, {pipeline_mode = #tpu.pipeline_mode<synchronous>, transform_indices = @transform_9, window_bounds = array<i64: 1, 32>}, {pipeline_mode = #tpu.pipeline_mode<synchronous>, transform_indices = @transform_10, window_bounds = array<i64: 32, 64>}, {pipeline_mode = #tpu.pipeline_mode<synchronous>, transform_indices = @transform_11, window_bounds = array<i64: 1, 64>}, {pipeline_mode = #tpu.pipeline_mode<synchronous>, transform_indices = @transform_12, window_bounds = array<i64: 64, 32>}, {pipeline_mode = #tpu.pipeline_mode<synchronous>, transform_indices = @transform_13, window_bounds = array<i64: 1, 32>}, {pipeline_mode = #tpu.pipeline_mode<synchronous>, transform_indices = @transform_14, window_bounds = array<i64: 1, 32>}, {pipeline_mode = #tpu.pipeline_mode<synchronous>, transform_indices = @transform_15, window_bounds = array<i64: 1, 32>}, {pipeline_mode = #tpu.pipeline_mode<synchronous>, transform_indices = @transform_16, window_bounds = array<i64: 8, 2, 32>}]} {
    %c0 = arith.constant 0 : index
    %c0_0 = arith.constant 0 : index
    %c0_1 = arith.constant 0 : index
    %0 = vector.load %arg1[%c0, %c0_0, %c0_1] : memref<8x2x32xf32, #tpu.memory_space<vmem>>, vector<8x2x32xf32>
    %1 = tpu.transpose %0, [1, 0, 2] : vector<8x2x32xf32> -> vector<2x8x32xf32>
    %2 = vector.shape_cast %1 : vector<2x8x32xf32> to vector<16x32xf32>
    %c0_2 = arith.constant 0 : index
    %c0_3 = arith.constant 0 : index
    %c0_4 = arith.constant 0 : index
    %3 = vector.load %arg2[%c0_2, %c0_3, %c0_4] : memref<8x2x32xf32, #tpu.memory_space<vmem>>, vector<8x2x32xf32>
    %4 = tpu.transpose %3, [1, 0, 2] : vector<8x2x32xf32> -> vector<2x8x32xf32>
    %5 = vector.shape_cast %4 : vector<2x8x32xf32> to vector<16x32xf32>
    %c0_5 = arith.constant 0 : index
    %c0_6 = arith.constant 0 : index
    %6 = vector.load %arg3[%c0_5, %c0_6] : memref<32x32xf32, #tpu.memory_space<vmem>>, vector<32x32xf32>
    %cst = arith.constant dense<0.000000e+00> : vector<16x32xf32>
    %7 = tpu.matmul %2, %6, %cst {dimension_numbers = #tpu.dot_dimension_numbers<[1], [0], [0], [1], [0, 0, 1, 1], [], []>} : vector<16x32xf32>, vector<32x32xf32>, vector<16x32xf32> -> vector<16x32xf32>
    %c0_7 = arith.constant 0 : index
    %c0_8 = arith.constant 0 : index
    %8 = vector.load %arg4[%c0_7, %c0_8] : memref<1x32xf32, #tpu.memory_space<vmem>>, vector<1x32xf32>
    %9 = vector.broadcast %8 : vector<1x32xf32> to vector<16x32xf32>
    %10 = arith.addf %7, %9 : vector<16x32xf32>
    %c0_9 = arith.constant 0 : index
    %c0_10 = arith.constant 0 : index
    %11 = vector.load %arg5[%c0_9, %c0_10] : memref<32x64xf32, #tpu.memory_space<vmem>>, vector<32x64xf32>
    %cst_11 = arith.constant dense<0.000000e+00> : vector<16x64xf32>
    %12 = tpu.matmul %5, %11, %cst_11 {dimension_numbers = #tpu.dot_dimension_numbers<[1], [0], [0], [1], [0, 0, 1, 1], [], []>} : vector<16x32xf32>, vector<32x64xf32>, vector<16x64xf32> -> vector<16x64xf32>
    %c0_12 = arith.constant 0 : index
    %c0_13 = arith.constant 0 : index
    %13 = vector.load %arg6[%c0_12, %c0_13] : memref<1x64xf32, #tpu.memory_space<vmem>>, vector<1x64xf32>
    %14 = vector.broadcast %13 : vector<1x64xf32> to vector<16x64xf32>
    %15 = arith.addf %12, %14 : vector<16x64xf32>
    %16 = vector.extract_strided_slice %15 {offsets = [0, 0], sizes = [16, 32], strides = [1, 1]} : vector<16x64xf32> to vector<16x32xf32>
    %17 = vector.extract_strided_slice %15 {offsets = [0, 32], sizes = [16, 32], strides = [1, 1]} : vector<16x64xf32> to vector<16x32xf32>
    %18 = vector.shape_cast %10 : vector<16x32xf32> to vector<16x4x8xf32>
    %19 = vector.shape_cast %16 : vector<16x32xf32> to vector<16x4x8xf32>
    %20 = vector.shape_cast %17 : vector<16x32xf32> to vector<16x4x8xf32>
    %21 = vector.extract_strided_slice %18 {offsets = [0, 0, 0], sizes = [8, 4, 8], strides = [1, 1, 1]} : vector<16x4x8xf32> to vector<8x4x8xf32>
    %22 = vector.extract_strided_slice %19 {offsets = [0, 0, 0], sizes = [8, 4, 8], strides = [1, 1, 1]} : vector<16x4x8xf32> to vector<8x4x8xf32>
    %23 = vector.extract_strided_slice %20 {offsets = [0, 0, 0], sizes = [8, 4, 8], strides = [1, 1, 1]} : vector<16x4x8xf32> to vector<8x4x8xf32>
    "tpu.trace_start"() <{level = 10 : i32, message = "qhd,khd->hqk"}> : () -> ()
    %cst_14 = arith.constant dense<0.000000e+00> : vector<4x8x8xf32>
    %24 = tpu.matmul %21, %22, %cst_14 {dimension_numbers = #tpu.dot_dimension_numbers<[2], [2], [0], [0], [0, 1, 0, 0, 1, 0], [1], [1]>} : vector<8x4x8xf32>, vector<8x4x8xf32>, vector<4x8x8xf32> -> vector<4x8x8xf32>
    "tpu.trace_stop"() : () -> ()
    %cst_15 = arith.constant dense<0xFF800000> : vector<4x8xf32>
    %25 = vector.multi_reduction <maximumf>, %24, %cst_15 [2] : vector<4x8x8xf32> to vector<4x8xf32>
    %26 = vector.shape_cast %25 : vector<4x8xf32> to vector<4x8x1xf32>
    %27 = vector.broadcast %26 : vector<4x8x1xf32> to vector<4x8x8xf32>
    %28 = arith.subf %24, %27 : vector<4x8x8xf32>
    %29 = math.exp %28 : vector<4x8x8xf32>
    %cst_16 = arith.constant dense<0.000000e+00> : vector<4x8xf32>
    %30 = vector.multi_reduction <add>, %29, %cst_16 [2] : vector<4x8x8xf32> to vector<4x8xf32>
    %31 = vector.shape_cast %30 : vector<4x8xf32> to vector<4x8x1xf32>
    %32 = tpu.reciprocal %31 {approx = true} : vector<4x8x1xf32> -> vector<4x8x1xf32>
    %33 = vector.broadcast %32 : vector<4x8x1xf32> to vector<4x8x8xf32>
    %34 = arith.mulf %29, %33 : vector<4x8x8xf32>
    "tpu.trace_start"() <{level = 10 : i32, message = "hqk,khd->qhd"}> : () -> ()
    %cst_17 = arith.constant dense<0.000000e+00> : vector<4x8x8xf32>
    %35 = tpu.matmul %23, %34, %cst_17 {dimension_numbers = #tpu.dot_dimension_numbers<[0], [2], [2], [1], [0, 1, 0, 2, 1, 1], [1], [0]>} : vector<8x4x8xf32>, vector<4x8x8xf32>, vector<4x8x8xf32> -> vector<4x8x8xf32>
    %36 = tpu.transpose %35, [2, 0, 1] : vector<4x8x8xf32> -> vector<8x4x8xf32>
    "tpu.trace_stop"() : () -> ()
    %37 = vector.extract_strided_slice %18 {offsets = [8, 0, 0], sizes = [8, 4, 8], strides = [1, 1, 1]} : vector<16x4x8xf32> to vector<8x4x8xf32>
    %38 = vector.extract_strided_slice %19 {offsets = [8, 0, 0], sizes = [8, 4, 8], strides = [1, 1, 1]} : vector<16x4x8xf32> to vector<8x4x8xf32>
    %39 = vector.extract_strided_slice %20 {offsets = [8, 0, 0], sizes = [8, 4, 8], strides = [1, 1, 1]} : vector<16x4x8xf32> to vector<8x4x8xf32>
    "tpu.trace_start"() <{level = 10 : i32, message = "qhd,khd->hqk"}> : () -> ()
    %cst_18 = arith.constant dense<0.000000e+00> : vector<4x8x8xf32>
    %40 = tpu.matmul %37, %38, %cst_18 {dimension_numbers = #tpu.dot_dimension_numbers<[2], [2], [0], [0], [0, 1, 0, 0, 1, 0], [1], [1]>} : vector<8x4x8xf32>, vector<8x4x8xf32>, vector<4x8x8xf32> -> vector<4x8x8xf32>
    "tpu.trace_stop"() : () -> ()
    %cst_19 = arith.constant dense<0xFF800000> : vector<4x8xf32>
    %41 = vector.multi_reduction <maximumf>, %40, %cst_19 [2] : vector<4x8x8xf32> to vector<4x8xf32>
    %42 = vector.shape_cast %41 : vector<4x8xf32> to vector<4x8x1xf32>
    %43 = vector.broadcast %42 : vector<4x8x1xf32> to vector<4x8x8xf32>
    %44 = arith.subf %40, %43 : vector<4x8x8xf32>
    %45 = math.exp %44 : vector<4x8x8xf32>
    %cst_20 = arith.constant dense<0.000000e+00> : vector<4x8xf32>
    %46 = vector.multi_reduction <add>, %45, %cst_20 [2] : vector<4x8x8xf32> to vector<4x8xf32>
    %47 = vector.shape_cast %46 : vector<4x8xf32> to vector<4x8x1xf32>
    %48 = tpu.reciprocal %47 {approx = true} : vector<4x8x1xf32> -> vector<4x8x1xf32>
    %49 = vector.broadcast %48 : vector<4x8x1xf32> to vector<4x8x8xf32>
    %50 = arith.mulf %45, %49 : vector<4x8x8xf32>
    "tpu.trace_start"() <{level = 10 : i32, message = "hqk,khd->qhd"}> : () -> ()
    %cst_21 = arith.constant dense<0.000000e+00> : vector<4x8x8xf32>
    %51 = tpu.matmul %39, %50, %cst_21 {dimension_numbers = #tpu.dot_dimension_numbers<[0], [2], [2], [1], [0, 1, 0, 2, 1, 1], [1], [0]>} : vector<8x4x8xf32>, vector<4x8x8xf32>, vector<4x8x8xf32> -> vector<4x8x8xf32>
    %52 = tpu.transpose %51, [2, 0, 1] : vector<4x8x8xf32> -> vector<8x4x8xf32>
    "tpu.trace_stop"() : () -> ()
    %53 = tpu.concatenate %36, %52 in 0 : vector<8x4x8xf32>, vector<8x4x8xf32> -> vector<16x4x8xf32>
    %54 = vector.shape_cast %53 : vector<16x4x8xf32> to vector<16x32xf32>
    %c0_22 = arith.constant 0 : index
    %c0_23 = arith.constant 0 : index
    %55 = vector.load %arg7[%c0_22, %c0_23] : memref<32x32xf32, #tpu.memory_space<vmem>>, vector<32x32xf32>
    %cst_24 = arith.constant dense<0.000000e+00> : vector<16x32xf32>
    %56 = tpu.matmul %54, %55, %cst_24 {dimension_numbers = #tpu.dot_dimension_numbers<[1], [0], [0], [1], [0, 0, 1, 1], [], []>} : vector<16x32xf32>, vector<32x32xf32>, vector<16x32xf32> -> vector<16x32xf32>
    %c0_25 = arith.constant 0 : index
    %c0_26 = arith.constant 0 : index
    %57 = vector.load %arg8[%c0_25, %c0_26] : memref<1x32xf32, #tpu.memory_space<vmem>>, vector<1x32xf32>
    %58 = vector.broadcast %57 : vector<1x32xf32> to vector<16x32xf32>
    %59 = arith.addf %56, %58 : vector<16x32xf32>
    %60 = arith.addf %2, %59 : vector<16x32xf32>
    %c0_27 = arith.constant 0 : index
    %c0_28 = arith.constant 0 : index
    %61 = vector.load %arg9[%c0_27, %c0_28] : memref<1x32xf32, #tpu.memory_space<vmem>>, vector<1x32xf32>
    %c0_29 = arith.constant 0 : index
    %c0_30 = arith.constant 0 : index
    %62 = vector.load %arg10[%c0_29, %c0_30] : memref<1x32xf32, #tpu.memory_space<vmem>>, vector<1x32xf32>
    %cst_31 = arith.constant dense<0.000000e+00> : vector<16xf32>
    %63 = vector.multi_reduction <add>, %60, %cst_31 [1] : vector<16x32xf32> to vector<16xf32>
    %64 = vector.shape_cast %63 : vector<16xf32> to vector<16x1xf32>
    %cst_32 = arith.constant 3.200000e+01 : f32
    %65 = vector.broadcast %cst_32 : f32 to vector<16x1xf32>
    %66 = arith.divf %64, %65 : vector<16x1xf32>
    %67 = vector.broadcast %66 : vector<16x1xf32> to vector<16x32xf32>
    %68 = arith.subf %60, %67 : vector<16x32xf32>
    %69 = arith.mulf %68, %68 : vector<16x32xf32>
    %cst_33 = arith.constant dense<0.000000e+00> : vector<16xf32>
    %70 = vector.multi_reduction <add>, %69, %cst_33 [1] : vector<16x32xf32> to vector<16xf32>
    %71 = vector.shape_cast %70 : vector<16xf32> to vector<16x1xf32>
    %cst_34 = arith.constant 3.200000e+01 : f32
    %72 = vector.broadcast %cst_34 : f32 to vector<16x1xf32>
    %73 = arith.divf %71, %72 : vector<16x1xf32>
    %cst_35 = arith.constant 9.99999974E-6 : f32
    %74 = vector.broadcast %cst_35 : f32 to vector<16x1xf32>
    %75 = arith.addf %73, %74 : vector<16x1xf32>
    %76 = math.rsqrt %75 : vector<16x1xf32>
    %77 = vector.broadcast %76 : vector<16x1xf32> to vector<16x32xf32>
    %78 = arith.mulf %68, %77 : vector<16x32xf32>
    %79 = vector.broadcast %61 : vector<1x32xf32> to vector<16x32xf32>
    %80 = arith.mulf %78, %79 : vector<16x32xf32>
    %81 = vector.broadcast %62 : vector<1x32xf32> to vector<16x32xf32>
    %82 = arith.addf %80, %81 : vector<16x32xf32>
    %c0_36 = arith.constant 0 : index
    %c0_37 = arith.constant 0 : index
    %83 = vector.load %arg11[%c0_36, %c0_37] : memref<32x64xf32, #tpu.memory_space<vmem>>, vector<32x64xf32>
    %cst_38 = arith.constant dense<0.000000e+00> : vector<16x64xf32>
    %84 = tpu.matmul %82, %83, %cst_38 {dimension_numbers = #tpu.dot_dimension_numbers<[1], [0], [0], [1], [0, 0, 1, 1], [], []>} : vector<16x32xf32>, vector<32x64xf32>, vector<16x64xf32> -> vector<16x64xf32>
    %c0_39 = arith.constant 0 : index
    %c0_40 = arith.constant 0 : index
    %85 = vector.load %arg12[%c0_39, %c0_40] : memref<1x64xf32, #tpu.memory_space<vmem>>, vector<1x64xf32>
    %86 = vector.broadcast %85 : vector<1x64xf32> to vector<16x64xf32>
    %87 = arith.addf %84, %86 : vector<16x64xf32>
    %cst_41 = arith.constant 0.000000e+00 : f32
    %88 = vector.broadcast %cst_41 : f32 to vector<16x64xf32>
    %89 = arith.maximumf %87, %88 : vector<16x64xf32>
    %c0_42 = arith.constant 0 : index
    %c0_43 = arith.constant 0 : index
    %90 = vector.load %arg13[%c0_42, %c0_43] : memref<64x32xf32, #tpu.memory_space<vmem>>, vector<64x32xf32>
    %cst_44 = arith.constant dense<0.000000e+00> : vector<16x32xf32>
    %91 = tpu.matmul %89, %90, %cst_44 {dimension_numbers = #tpu.dot_dimension_numbers<[1], [0], [0], [1], [0, 0, 1, 1], [], []>} : vector<16x64xf32>, vector<64x32xf32>, vector<16x32xf32> -> vector<16x32xf32>
    %c0_45 = arith.constant 0 : index
    %c0_46 = arith.constant 0 : index
    %92 = vector.load %arg14[%c0_45, %c0_46] : memref<1x32xf32, #tpu.memory_space<vmem>>, vector<1x32xf32>
    %93 = vector.broadcast %92 : vector<1x32xf32> to vector<16x32xf32>
    %94 = arith.addf %91, %93 : vector<16x32xf32>
    %95 = arith.addf %82, %94 : vector<16x32xf32>
    %c0_47 = arith.constant 0 : index
    %c0_48 = arith.constant 0 : index
    %96 = vector.load %arg15[%c0_47, %c0_48] : memref<1x32xf32, #tpu.memory_space<vmem>>, vector<1x32xf32>
    %c0_49 = arith.constant 0 : index
    %c0_50 = arith.constant 0 : index
    %97 = vector.load %arg16[%c0_49, %c0_50] : memref<1x32xf32, #tpu.memory_space<vmem>>, vector<1x32xf32>
    %cst_51 = arith.constant dense<0.000000e+00> : vector<16xf32>
    %98 = vector.multi_reduction <add>, %95, %cst_51 [1] : vector<16x32xf32> to vector<16xf32>
    %99 = vector.shape_cast %98 : vector<16xf32> to vector<16x1xf32>
    %cst_52 = arith.constant 3.200000e+01 : f32
    %100 = vector.broadcast %cst_52 : f32 to vector<16x1xf32>
    %101 = arith.divf %99, %100 : vector<16x1xf32>
    %102 = vector.broadcast %101 : vector<16x1xf32> to vector<16x32xf32>
    %103 = arith.subf %95, %102 : vector<16x32xf32>
    %104 = arith.mulf %103, %103 : vector<16x32xf32>
    %cst_53 = arith.constant dense<0.000000e+00> : vector<16xf32>
    %105 = vector.multi_reduction <add>, %104, %cst_53 [1] : vector<16x32xf32> to vector<16xf32>
    %106 = vector.shape_cast %105 : vector<16xf32> to vector<16x1xf32>
    %cst_54 = arith.constant 3.200000e+01 : f32
    %107 = vector.broadcast %cst_54 : f32 to vector<16x1xf32>
    %108 = arith.divf %106, %107 : vector<16x1xf32>
    %cst_55 = arith.constant 9.99999974E-6 : f32
    %109 = vector.broadcast %cst_55 : f32 to vector<16x1xf32>
    %110 = arith.addf %108, %109 : vector<16x1xf32>
    %111 = math.rsqrt %110 : vector<16x1xf32>
    %112 = vector.broadcast %111 : vector<16x1xf32> to vector<16x32xf32>
    %113 = arith.mulf %103, %112 : vector<16x32xf32>
    %114 = vector.broadcast %96 : vector<1x32xf32> to vector<16x32xf32>
    %115 = arith.mulf %113, %114 : vector<16x32xf32>
    %116 = vector.broadcast %97 : vector<1x32xf32> to vector<16x32xf32>
    %117 = arith.addf %115, %116 : vector<16x32xf32>
    %118 = vector.shape_cast %117 : vector<16x32xf32> to vector<2x8x32xf32>
    %119 = tpu.transpose %118, [1, 0, 2] : vector<2x8x32xf32> -> vector<8x2x32xf32>
    %c0_56 = arith.constant 0 : index
    %c0_57 = arith.constant 0 : index
    %c0_58 = arith.constant 0 : index
    %120 = vector.load %arg17[%c0_56, %c0_57, %c0_58] : memref<8x2x32xf32, #tpu.memory_space<vmem>>, vector<8x2x32xf32>
    tpu.vector_store %arg17[%c0_56, %c0_57, %c0_58], %119 {strides = array<i32>} : memref<8x2x32xf32, #tpu.memory_space<vmem>>, vector<8x2x32xf32>,
    return
  }
  func.func @transform_0(%arg0: i32) -> (i32, i32, i32) {
    %c0_i32 = arith.constant 0 : i32
    %c0_i32_0 = arith.constant 0 : i32
    %c0_i32_1 = arith.constant 0 : i32
    %c0_i32_2 = arith.constant 0 : i32
    return %c0_i32, %c0_i32_0, %c0_i32_1 : i32, i32, i32
  }
  func.func @transform_1(%arg0: i32) -> (i32, i32, i32) {
    %c0_i32 = arith.constant 0 : i32
    %c0_i32_0 = arith.constant 0 : i32
    %c0_i32_1 = arith.constant 0 : i32
    %c0_i32_2 = arith.constant 0 : i32
    return %c0_i32, %c0_i32_0, %c0_i32_1 : i32, i32, i32
  }
  func.func @transform_2(%arg0: i32) -> (i32, i32) {
    %c0_i32 = arith.constant 0 : i32
    %c0_i32_0 = arith.constant 0 : i32
    %c0_i32_1 = arith.constant 0 : i32
    return %c0_i32, %c0_i32_0 : i32, i32
  }
  func.func @transform_3(%arg0: i32) -> (i32, i32) {
    %c0_i32 = arith.constant 0 : i32
    %c0_i32_0 = arith.constant 0 : i32
    %c0_i32_1 = arith.constant 0 : i32
    return %c0_i32, %c0_i32_0 : i32, i32
  }
  func.func @transform_4(%arg0: i32) -> (i32, i32) {
    %c0_i32 = arith.constant 0 : i32
    %c0_i32_0 = arith.constant 0 : i32
    %c0_i32_1 = arith.constant 0 : i32
    return %c0_i32, %c0_i32_0 : i32, i32
  }
  func.func @transform_5(%arg0: i32) -> (i32, i32) {
    %c0_i32 = arith.constant 0 : i32
    %c0_i32_0 = arith.constant 0 : i32
    %c0_i32_1 = arith.constant 0 : i32
    return %c0_i32, %c0_i32_0 : i32, i32
  }
  func.func @transform_6(%arg0: i32) -> (i32, i32) {
    %c0_i32 = arith.constant 0 : i32
    %c0_i32_0 = arith.constant 0 : i32
    %c0_i32_1 = arith.constant 0 : i32
    return %c0_i32, %c0_i32_0 : i32, i32
  }
  func.func @transform_7(%arg0: i32) -> (i32, i32) {
    %c0_i32 = arith.constant 0 : i32
    %c0_i32_0 = arith.constant 0 : i32
    %c0_i32_1 = arith.constant 0 : i32
    return %c0_i32, %c0_i32_0 : i32, i32
  }
  func.func @transform_8(%arg0: i32) -> (i32, i32) {
    %c0_i32 = arith.constant 0 : i32
    %c0_i32_0 = arith.constant 0 : i32
    %c0_i32_1 = arith.constant 0 : i32
    return %c0_i32, %c0_i32_0 : i32, i32
  }
  func.func @transform_9(%arg0: i32) -> (i32, i32) {
    %c0_i32 = arith.constant 0 : i32
    %c0_i32_0 = arith.constant 0 : i32
    %c0_i32_1 = arith.constant 0 : i32
    return %c0_i32, %c0_i32_0 : i32, i32
  }
  func.func @transform_10(%arg0: i32) -> (i32, i32) {
    %c0_i32 = arith.constant 0 : i32
    %c0_i32_0 = arith.constant 0 : i32
    %c0_i32_1 = arith.constant 0 : i32
    return %c0_i32, %c0_i32_0 : i32, i32
  }
  func.func @transform_11(%arg0: i32) -> (i32, i32) {
    %c0_i32 = arith.constant 0 : i32
    %c0_i32_0 = arith.constant 0 : i32
    %c0_i32_1 = arith.constant 0 : i32
    return %c0_i32, %c0_i32_0 : i32, i32
  }
  func.func @transform_12(%arg0: i32) -> (i32, i32) {
    %c0_i32 = arith.constant 0 : i32
    %c0_i32_0 = arith.constant 0 : i32
    %c0_i32_1 = arith.constant 0 : i32
    return %c0_i32, %c0_i32_0 : i32, i32
  }
  func.func @transform_13(%arg0: i32) -> (i32, i32) {
    %c0_i32 = arith.constant 0 : i32
    %c0_i32_0 = arith.constant 0 : i32
    %c0_i32_1 = arith.constant 0 : i32
    return %c0_i32, %c0_i32_0 : i32, i32
  }
  func.func @transform_14(%arg0: i32) -> (i32, i32) {
    %c0_i32 = arith.constant 0 : i32
    %c0_i32_0 = arith.constant 0 : i32
    %c0_i32_1 = arith.constant 0 : i32
    return %c0_i32, %c0_i32_0 : i32, i32
  }
  func.func @transform_15(%arg0: i32) -> (i32, i32) {
    %c0_i32 = arith.constant 0 : i32
    %c0_i32_0 = arith.constant 0 : i32
    %c0_i32_1 = arith.constant 0 : i32
    return %c0_i32, %c0_i32_0 : i32, i32
  }
  func.func @transform_16(%arg0: i32) -> (i32, i32, i32) {
    %c0_i32 = arith.constant 0 : i32
    %c0_i32_0 = arith.constant 0 : i32
    %c0_i32_1 = arith.constant 0 : i32
    %c0_i32_2 = arith.constant 0 : i32
    return %c0_i32, %c0_i32_0, %c0_i32_1 : i32, i32, i32
  }
}

</mosaic_0001>

<bundles_post_ra>
// kernel: tpu_custom_call.1
= control target key start
LH: loop header
LB: loop body
LE: loop exit
PB: predicated region body
PF: predicated region fallthrough
CT: control target
= control target key end

     0   :  { %s6191_s0 = inlined_call_operand.hbm [shape: f32[8,2,32], index: 0, kind: input, shape index: {}]   ;;  %s6192_s1 = inlined_call_operand.hbm [shape: f32[8,2,32], index: 1, kind: input, shape index: {}]   ;;  %s6193_s2 = inlined_call_operand.vmem [shape: f32[32,32], index: 2, kind: input, shape index: {}]   ;;  %s6194_s3 = inlined_call_operand.vmem [shape: f32[1,32], index: 3, kind: input, shape index: {}]   ;;  %s6195_s4 = inlined_call_operand.vmem [shape: f32[32,64], index: 4, kind: input, shape index: {}]   ;;  %s6196_s5 = inlined_call_operand.vmem [shape: f32[1,64], index: 5, kind: input, shape index: {}]   ;;  %s6197_s6 = inlined_call_operand.vmem [shape: f32[32,32], index: 6, kind: input, shape index: {}]   ;;  %s6198_s7 = inlined_call_operand.vmem [shape: f32[1,32], index: 7, kind: input, shape index: {}]   ;;  %s6199_s8 = inlined_call_operand.vmem [shape: f32[1,32], index: 8, kind: input, shape index: {}]   ;;  %s6200_s9 = inlined_call_operand.vmem [shape: f32[1,32], index: 9, kind: input, shape index: {}]   ;;  %s6201_s10 = inlined_call_operand.hbm [shape: f32[32,64], index: 10, kind: input, shape index: {}]   ;;  %s6202_s11 = inlined_call_operand.vmem [shape: f32[1,64], index: 11, kind: input, shape index: {}]   ;;  %s6203_s12 = inlined_call_operand.vmem [shape: f32[64,32], index: 12, kind: input, shape index: {}]   ;;  %s6204_s13 = inlined_call_operand.vmem [shape: f32[1,32], index: 13, kind: input, shape index: {}]   ;;  %s6205_s14 = inlined_call_operand.vmem [shape: f32[1,32], index: 14, kind: input, shape index: {}]   ;;  %s6206_s15 = inlined_call_operand.vmem [shape: f32[1,32], index: 15, kind: input, shape index: {}]   ;;  %s6207_s16 = inlined_call_operand.hbm [shape: f32[8,2,32], index: 16, kind: output, shape index: {}]  }
   0x1   :  { %6208 = sst [smem:[#allocation12_spill]] %s6191_s0 }
   0x2   :  { %21 = vsyncpa [#allocation3], 0 }
   0x3   :  { %22 = vsyncpa [#allocation6], 0 }
   0x4   :  { %23 = vsyncpa [#allocation4], 0  ;;  %s41_s23 = sshll.u32 %s6192_s1, 4  ;;  %s5129_s24 = smov [#allocation5]   ;;  %s42_s23 = int_to_ptr.hbm [resolvable:$true] %s41_s23 }
   0x5   :  { %s43_s25 = sshll.u32 %s5129_s24, 4  ;;  %s6209_s28 = sld [smem:[#allocation12_spill]]  ;;  %s44_s25 = int_to_ptr.vmem [resolvable:$true] %s43_s25 }
   0x6   :  { %s5130_s30 = smov 32   ;;  %s5131_s0 = smov 2  }
   0x7   :  { %49 = dma.hbm_to_vmem [thread:$0]  %s42_s23, 256, %s44_s25, [#allocation6], %s5130_s30, %s5130_s30, %s5131_s0  }
   0x8   :  { %s5132_s17 = smov [#allocation2]   ;;  %s70_s1 = sshll.u32 %s6201_s10, 4  ;;  %s71_s1 = int_to_ptr.hbm [resolvable:$true] %s70_s1 }
   0x9   :  { %s30_s18 = sshll.u32 %s5132_s17, 4  ;;  %s5133_s21 = smov [#allocation7]   ;;  %s31_s18 = int_to_ptr.vmem [resolvable:$true] %s30_s18 }
   0xa   :  { %s72_s22 = sshll.u32 %s5133_s21, 4  ;;  %s5134_s24 = smov 128   ;;  %s73_s22 = int_to_ptr.vmem [resolvable:$true] %s72_s22 }
   0xb   :  { %s28_s29 = sshll.u32 %s6209_s28, 4  ;;  %s5135_s26 = smov 8   ;;  %s29_s29 = int_to_ptr.hbm [resolvable:$true] %s28_s29 }
   0xc   :  { %36 = dma.hbm_to_vmem [thread:$0]  %s29_s29, 256, %s31_s18, [#allocation3], %s5130_s30, %s5130_s30, %s5131_s0  }
   0xd   :  { %78 = dma.hbm_to_vmem [thread:$0]  %s71_s1, 512, %s73_s22, [#allocation6], %s5134_s24, %s5134_s24, %s5135_s26  }
   0xe   :  { %5123 = dma.done.wait [#allocation3], 256  }
   0xf   :  { %5124 = vsyncadd [#allocation3], 4294967040 }
  0x10   :  { %5125 = dma.done.wait [#allocation6], 768  }
  0x11   :  { %5126 = vsyncadd [#allocation6], 4294966528  ;;  %v5136_v0 = vmov 1983009808   ;;  %v201_v2 = vld [vmem:[%s6193_s2 + $0x18] sm:$0xff]  ;;  %v200_v3 = vld [vmem:[%s6193_s2 + $0x10] sm:$0xff] }
  0x12   :  { %v113_v1 = vunpack.c.l.s4 %v5136_v0  ;;  %225 = vmatpush.msra.mxu1 %v201_v2  ;;  %v199_v4 = vld [vmem:[%s6193_s2 + $0x8] sm:$0xff]  ;;  %v101_v5 = vld [vmem:[#allocation2] sm:$0x3]  ;;  %v102_v6 = vld [vmem:[#allocation2 + $0x2] sm:$0x3]  ;;  %vm110_vm0 = vcmask 1047556  }
  0x13   :  { %v103_v7 = vld [vmem:[#allocation2 + $0x4] sm:$0x3]  ;;  %v104_v8 = vld [vmem:[#allocation2 + $0x6] sm:$0x3]  ;;  %v105_v9 = vld [vmem:[#allocation2 + $0x8] sm:$0x3] }
  0x14   :  { %226 = vmatpush.msra.mxu1 %v200_v3  ;;  %v106_v10 = vld [vmem:[#allocation2 + $0xa] sm:$0x3]  ;;  %v107_v11 = vld [vmem:[#allocation2 + $0xc] sm:$0x3]  ;;  %v108_v12 = vld [vmem:[#allocation2 + $0xe] sm:$0x3]  ;;  %v5256_v13 = vunpack.c.0.s8 %v113_v1 }
  0x15   :  { %v5137_v14 = vmov 1934713408   ;;  %v198_v16 = vld [vmem:[%s6193_s2] sm:$0xff]  ;;  %v109_v17 = vrot.slane %v103_v7, 4  ;;  %v116_v18 = vrot.slane %v104_v8, 4  ;;  %v122_v19 = vrot.slane %v107_v11, 4 }
  0x16   :  { %v137_v15 = vunpack.c.l.s4 %v5137_v14  ;;  %v128_v20 = vrot.slane %v108_v12, 4  ;;  %227 = vmatpush.msra.mxu1 %v199_v4  ;;  %v239_v21 = vld [vmem:[%s6195_s4 + $0x18] sm:$0xff]  ;;  %v238_v26 = vld [vmem:[%s6195_s4 + $0x10] sm:$0xff]  ;;  %v237_v43 = vld [vmem:[%s6195_s4 + $0x8] sm:$0xff]  ;;  %vm206_vm1 = vcmask 261120   ;;  %s5138_s25 = smov 112  }
  0x17   :  { %v111_v22 = vsel %vm110_vm0, %v109_v17, %v101_v5  ;;  %v117_v23 = vsel %vm110_vm0, %v116_v18, %v102_v6  ;;  %v123_v24 = vsel %vm110_vm0, %v122_v19, %v105_v9  ;;  %v151_v27 = vld [vmem:[#allocation5 + $0x2] sm:$0x3]  ;;  %v153_v28 = vld [vmem:[#allocation5 + $0x6] sm:$0x3]  ;;  %v152_v33 = vld [vmem:[#allocation5 + $0x4] sm:$0x3] }
  0x18   :  { %v129_v25 = vsel %vm110_vm0, %v128_v20, %v106_v10  ;;  %228 = vmatpush.msra.mxu1 %v198_v16  ;;  %v115_v29 = vperm.slane %v111_v22, %v5256_v13  ;;  %v121_v30 = vperm.slane %v117_v23, %v5256_v13  ;;  %v127_v31 = vperm.slane %v123_v24, %v5256_v13  ;;  %v154_v34 = vld [vmem:[#allocation5 + $0x8] sm:$0x3]  ;;  %v156_v35 = vld [vmem:[#allocation5 + $0xc] sm:$0x3]  ;;  %v155_v37 = vld [vmem:[#allocation5 + $0xa] sm:$0x3] }
  0x19   :  { %v133_v32 = vperm.slane %v129_v25, %v5256_v13  ;;  %v5275_v36 = vunpack.c.0.s8 %v137_v15  ;;  %v157_v38 = vld [vmem:[#allocation5 + $0xe] sm:$0x3]  ;;  %v164_v39 = vrot.slane %v153_v28, 4  ;;  %v170_v40 = vrot.slane %v156_v35, 4  ;;  %v236_v45 = vld [vmem:[%s6195_s4] sm:$0xff]  ;;  %s5139_s27 = smov 120  }
  0x1a   :  { %262 = vmatpush.msrb.mxu1 %v239_v21  ;;  %v134_v41 = vrot.slane %v121_v30, 4  ;;  %v176_v44 = vrot.slane %v157_v38, 4  ;;  %v158_v46 = vrot.slane %v152_v33, 4  ;;  %v150_v54 = vld [vmem:[#allocation5] sm:$0x3]  ;;  %s5140_s28 = smov 104  }
  0x1b   :  { %v140_v42 = vrot.slane %v133_v32, 4  ;;  %v165_v49 = vsel %vm110_vm0, %v164_v39, %v151_v27  ;;  %v171_v52 = vsel %vm110_vm0, %v170_v40, %v154_v34  ;;  %v4976_v10 = vld [vmem:[%s6194_s3] ss:$0 sm:$0xff]  ;;  %s5141_s3 = smov 96   ;;  %vm1407_vm2 = vcmask 64512   ;;  %s5143_s18 = smov 24  }
  0x1c   :  { %263 = vmatpush.msrb.mxu1 %v238_v26  ;;  %v135_v47 = vsel %vm110_vm0, %v134_v41, %v115_v29  ;;  %v177_v53 = vsel %vm110_vm0, %v176_v44, %v155_v37  ;;  %v169_v57 = vperm.slane %v165_v49, %v5256_v13  ;;  %v175_v58 = vperm.slane %v171_v52, %v5256_v13  ;;  %v4977_v16 = vld [vmem:[%s6196_s5] ss:$0 sm:$0xff]  ;;  %s5142_s5 = smov 16  }
  0x1d   :  { %v141_v48 = vsel %vm110_vm0, %v140_v42, %v127_v31  ;;  %v139_v50 = vperm.slane %v135_v47, %v5275_v36  ;;  %v181_v55 = vperm.slane %v177_v53, %v5256_v13  ;;  %v159_v61 = vsel %vm110_vm0, %v158_v46, %v150_v54 }
  0x1e   :  { %v145_v51 = vperm.slane %v141_v48, %v5275_v36  ;;  %264 = vmatpush.msrb.mxu1 %v237_v43  ;;  %v163_v63 = vperm.slane %v159_v61, %v5256_v13  ;;  %v182_v0 = vrot.slane %v169_v57, 4  ;;  %vm4484_vm3 = vcmask 130048  }
  0x1f   :  { %v188_v59 = vrot.slane %v181_v55, 4  ;;  %v148_v62 = vrot.slane %v139_v50, 4  ;;  %vm4487_vm4 = vcmask 195584   ;;  %vm4643_vm12 = vcmask 523264  }
  0x20   :  { %v146_v56 = vrot.slane %v145_v51, 4  ;;  %265 = vmatpush.msrb.mxu1 %v236_v45  ;;  %v183_v4 = vsel %vm110_vm0, %v182_v0, %v163_v63 }
  0x21   :  { %v189_v1 = vsel %vm110_vm0, %v188_v59, %v175_v58  ;;  %v5302_v2 = vsel %vm110_vm0, %v145_v51, %v148_v62  ;;  %v187_v5 = vperm.slane %v183_v4, %v5275_v36 }
  0x22   :  { %v5294_v60 = vsel %vm110_vm0, %v146_v56, %v139_v50  ;;  %v193_v3 = vperm.slane %v189_v1, %v5275_v36 }
  0x23   :  { %4812 = vmatmul.msk.f32.vlgmr.msra.gmra.mxu1 %vm206_vm1, %v5294_v60  ;;  %v196_v8 = vrot.slane %v187_v5, 4 }
  0x24   :  { %v194_v6 = vrot.slane %v193_v3, 4 }
  0x25   :  { %v197_v9 = vsel %vm110_vm0, %v193_v3, %v196_v8 }
  0x26   :  { %v195_v7 = vsel %vm110_vm0, %v194_v6, %v187_v5 }
  0x2b   :  { %4813 = vmatmul.msk.f32.gmra.mxu1 %vm206_vm1, %v5302_v2 }
  0x33   :  { %4814 = vmatmul.msk.f32.vlgmr.msrb.gmra.mxu1 %vm206_vm1, %v195_v7 }
  0x3b   :  { %4815 = vmatmul.msk.f32.gmra.mxu1 %vm206_vm1, %v197_v9 }
  0xa0   :  { %v230_v11 = vpop.f32.mrf.mxu1 }
  0xa1   :  { %v231_v12 = vadd.f32 %v4976_v10, %v230_v11 }
  0xa3   :  { %281 = vrot.lane.b32.xlu2 %v231_v12, %s5138_s25  ;;  %275 = vrot.lane.b32.xlu1 %v231_v12, %s5139_s27  ;;  %v295_v24 = vrot.slane %v231_v12, 4 }
  0xa8   :  { %v233_v14 = vpop.f32.mrf.mxu1 }
  0xa9   :  { %v5318_v15 = vadd.f32 %v4976_v10, %v233_v14 }
  0xab   :  { %287 = vrot.lane.b32.xlu2 %v231_v12, %s5140_s28 }
  0xb0   :  { %v267_v17 = vpop.f32.mrf.mxu1 }
  0xb1   :  { %v5324_v18 = vadd.f32 %v4977_v16, %v267_v17 }
  0xb3   :  { %419 = vrot.lane.b32.xlu0 %v5324_v18, %s5140_s28  ;;  %413 = vrot.lane.b32.xlu1 %v5324_v18, %s5138_s25 }
  0xb8   :  { %v270_v19 = vpop.f32.mrf.mxu1 }
  0xb9   :  { %v5334_v20 = vadd.f32 %v4977_v16, %v270_v19 }
  0xbb   :  { %407 = vrot.lane.b32.xlu0 %v5324_v18, %s5139_s27  ;;  %537 = vrot.lane.b32.xlu1 %v5324_v18, %s5141_s3 }
  0xc3   :  { %421 = vrot.lane.b32.xlu1 %v5334_v20, %s5140_s28 }
  0xfd   :  { %v282_v21 = vpop.permute.xlu2 %281 }
  0xfe   :  { %v293_v22 = vrot.slane %v282_v21, 4  ;;  %v296_v26 = vsel %vm110_vm0, %v282_v21, %v295_v24 }
  0xff   :  { %v304_v29 = vperm.slane %v296_v26, %v5256_v13 }
 0x100   :  { %v294_v23 = vsel %vm110_vm0, %v293_v22, %v231_v12 }
 0x101   :  { %v300_v27 = vperm.slane %v294_v23, %v5256_v13  ;;  %v331_v37 = vrot.slane %v304_v29, 4 }
 0x103   :  { %v319_v33 = vrot.slane %v300_v27, 4 }
 0x105   :  { %v288_v25 = vpop.permute.xlu2 %287 }
 0x106   :  { %v305_v28 = vrot.slane %v288_v25, 4 }
 0x115   :  { %v276_v30 = vpop.permute.xlu1 %275 }
 0x116   :  { %v306_v31 = vsel %vm110_vm0, %v305_v28, %v276_v30  ;;  %v307_v32 = vrot.slane %v276_v30, 4 }
 0x117   :  { %v312_v34 = vperm.slane %v306_v31, %v5256_v13 }
 0x118   :  { %v308_v35 = vsel %vm110_vm0, %v288_v25, %v307_v32 }
 0x119   :  { %v316_v38 = vperm.slane %v308_v35, %v5256_v13  ;;  %v317_v39 = vrot.slane %v312_v34, 4  ;;  %v320_v40 = vsel %vm110_vm0, %v312_v34, %v319_v33 }
 0x11a   :  { %v328_v41 = vperm.slane %v320_v40, %v5275_v36 }
 0x11b   :  { %v318_v42 = vsel %vm110_vm0, %v317_v39, %v300_v27  ;;  %v329_v43 = vrot.slane %v316_v38, 4  ;;  %v332_v44 = vsel %vm110_vm0, %v316_v38, %v331_v37  ;;  %v427_v38 = vrot.slane %v5324_v18, 4 }
 0x11c   :  { %v324_v45 = vperm.slane %v318_v42, %v5275_v36  ;;  %v340_v46 = vperm.slane %v332_v44, %v5275_v36  ;;  %v343_v47 = vrot.slane %v328_v41, 4 }
 0x11d   :  { %v330_v48 = vsel %vm110_vm0, %v329_v43, %v304_v29 }
 0x11e   :  { %v336_v49 = vperm.slane %v330_v48, %v5275_v36  ;;  %v341_v50 = vrot.slane %v324_v45, 4  ;;  %v344_v51 = vsel %vm110_vm0, 0.0, %v343_v47  ;;  %v347_v52 = vrot.slane %v340_v46, 4 }
 0x11f   :  { %v678_v53 = vrot.slane %v344_v51, 4  ;;  %v673_v54 = vsel %vm110_vm0, %v343_v47, %v324_v45 }
 0x120   :  { %v342_v55 = vsel %vm110_vm0, 0.0, %v341_v50  ;;  %v345_v56 = vrot.slane %v336_v49, 4  ;;  %v348_v57 = vsel %vm110_vm0, 0.0, %v347_v52  ;;  %v677_v58 = vperm.slane %v673_v54, %v5256_v13 }
 0x121   :  { %v689_v59 = vrot.slane %v348_v57, 4  ;;  %v679_v61 = vsel %vm110_vm0, %v678_v53, %v342_v55  ;;  %v684_v62 = vsel %vm110_vm0, %v347_v52, %v336_v49 }
 0x122   :  { %v346_v63 = vsel %vm110_vm0, 0.0, %v345_v56  ;;  %v683_v0 = vperm.slane %v679_v61, %v5256_v13  ;;  %v688_v1 = vperm.slane %v684_v62, %v5256_v13  ;;  %v697_v3 = vrot.slane %v677_v58, 4 }
 0x123   :  { %v690_v4 = vsel %vm110_vm0, %v689_v59, %v346_v63 }
 0x124   :  { %v694_v5 = vperm.slane %v690_v4, %v5256_v13  ;;  %v695_v6 = vrot.slane %v683_v0, 4  ;;  %v698_v7 = vsel %vm110_vm0, %v683_v0, %v697_v3  ;;  %v709_v8 = vrot.slane %v688_v1, 4 }
 0x125   :  { %v420_v9 = vpop.permute.xlu0 %419  ;;  %v414_v10 = vpop.permute.xlu1 %413  ;;  %v706_v11 = vperm.slane %v698_v7, %v5275_v36 }
 0x126   :  { %549 = vrot.lane.b32.xlu1 %v420_v9, %s5141_s3  ;;  %545 = vrot.lane.b32.xlu0 %v414_v10, %s5141_s3  ;;  %v696_v12 = vsel %vm110_vm0, %v695_v6, %v677_v58  ;;  %v707_v16 = vrot.slane %v694_v5, 4  ;;  %v710_v17 = vsel %vm110_vm0, %v694_v5, %v709_v8  ;;  %v425_v33 = vrot.slane %v414_v10, 4 }
 0x127   :  { %v702_v14 = vperm.slane %v696_v12, %v5275_v36  ;;  %v718_v19 = vperm.slane %v710_v17, %v5275_v36  ;;  %v725_v21 = vrot.slane %v706_v11, 4  ;;  %v437_v35 = vrot.slane %v420_v9, 4 }
 0x128   :  { %v708_v22 = vsel %vm110_vm0, %v707_v16, %v688_v1  ;;  %v426_v39 = vsel %vm110_vm0, %v425_v33, %v5324_v18  ;;  %v428_v41 = vsel %vm110_vm0, %v414_v10, %v427_v38 }
 0x129   :  { %v721_v23 = vrot.slane %v702_v14, 4  ;;  %v714_v24 = vperm.slane %v708_v22, %v5275_v36  ;;  %v723_v25 = vrot.slane %v718_v19, 4  ;;  %v5377_v26 = vsel %vm110_vm0, %v718_v19, %v725_v21 }
 0x12a   :  { %v432_v42 = vperm.slane %v426_v39, %v5256_v13  ;;  %v436_v45 = vperm.slane %v428_v41, %v5256_v13 }
 0x12b   :  { %v719_v27 = vrot.slane %v714_v24, 4  ;;  %v5380_v28 = vsel %vm110_vm0, %v714_v24, %v721_v23  ;;  %v5383_v29 = vsel %vm110_vm0, %v723_v25, %v706_v11 }
 0x12c   :  { %v451_v46 = vrot.slane %v432_v42, 4  ;;  %v463_v55 = vrot.slane %v436_v45, 4 }
 0x12d   :  { %v408_v30 = vpop.permute.xlu0 %407  ;;  %v5389_v31 = vsel %vm110_vm0, %v719_v27, %v702_v14  ;;  %v5415_v6 = vpop.permute.xlu1 %537 }
 0x12e   :  { %541 = vrot.lane.b32.xlu2 %v408_v30, %s5141_s3  ;;  %415 = vrot.lane.b32.xlu0 %v5334_v20, %s5138_s25  ;;  %v439_v32 = vrot.slane %v408_v30, 4  ;;  %v438_v40 = vsel %vm110_vm0, %v437_v35, %v408_v30 }
 0x12f   :  { %v444_v43 = vperm.slane %v438_v40, %v5256_v13 }
 0x130   :  { %v440_v34 = vsel %vm110_vm0, %v420_v9, %v439_v32  ;;  %v563_v9 = vrot.slane %v5415_v6, 4 }
 0x131   :  { %v448_v37 = vperm.slane %v440_v34, %v5256_v13  ;;  %v449_v47 = vrot.slane %v444_v43, 4  ;;  %v452_v49 = vsel %vm110_vm0, %v444_v43, %v451_v46 }
 0x132   :  { %v460_v51 = vperm.slane %v452_v49, %v5275_v36 }
 0x133   :  { %v461_v44 = vrot.slane %v448_v37, 4  ;;  %v450_v18 = vsel %vm110_vm0, %v449_v47, %v432_v42  ;;  %v464_v58 = vsel %vm110_vm0, %v448_v37, %v463_v55 }
 0x134   :  { %v456_v53 = vperm.slane %v450_v18, %v5275_v36  ;;  %v475_v54 = vrot.slane %v460_v51, 4  ;;  %v472_v63 = vperm.slane %v464_v58, %v5275_v36 }
 0x135   :  { %v462_v48 = vsel %vm110_vm0, %v461_v44, %v436_v45  ;;  %v5417_v7 = vpop.permute.xlu1 %421 }
 0x136   :  { %277 = vrot.lane.b32.xlu0 %v5318_v15, %s5139_s27  ;;  %v468_v50 = vperm.slane %v462_v48, %v5275_v36  ;;  %v473_v57 = vrot.slane %v456_v53, 4  ;;  %v476_v59 = vsel %vm110_vm0, 0.0, %v475_v54  ;;  %v479_v1 = vrot.slane %v472_v63, 4 }
 0x138   :  { %v477_v52 = vrot.slane %v468_v50, 4  ;;  %v474_v62 = vsel %vm110_vm0, 0.0, %v473_v57  ;;  %v4864_v3 = vpack.i.bf16 %v468_v50, %v460_v51  ;;  %v480_v4 = vsel %vm110_vm0, 0.0, %v479_v1 }
 0x139   :  { %v4878_v0 = vpack.i.bf16 %v474_v62, %v456_v53  ;;  %v4885_v5 = vpack.i.bf16 %v480_v4, %v472_v63 }
 0x13a   :  { %v478_v56 = vsel %vm110_vm0, 0.0, %v477_v52 }
 0x13b   :  { %v4871_v61 = vpack.i.bf16 %v478_v56, %v476_v59 }
 0x154   :  { %4872 = vxpose.xlu2.b32.start.end [1/1] (short) (narrow) %v4871_v61, 8 }
 0x158   :  { %4879 = vxpose.xlu0.b32.start.end [1/1] (short) (narrow) %v4878_v0, 8 }
 0x15b   :  { %4865 = vxpose.xlu1.b32.start.end [1/1] (short) (narrow) %v4864_v3, 8 }
 0x160   :  { %4886 = vxpose.xlu0.b32.start.end [1/1] (short) (narrow) %v4885_v5, 8 }
 0x188   :  { %v5419_v8 = vpop.permute.xlu2 %541 }
 0x189   :  { %v575_v10 = vrot.slane %v5419_v8, 4 }
 0x198   :  { %v5423_v11 = vpop.permute.xlu0 %545  ;;  %v5425_v12 = vpop.permute.xlu1 %549 }
 0x199   :  { %v564_v14 = vsel %vm110_vm0, %v5423_v11, %v563_v9  ;;  %v576_v16 = vsel %vm110_vm0, %v5425_v12, %v575_v10 }
 0x19a   :  { %v572_v17 = vperm.slane %v564_v14, %v5256_v13  ;;  %v584_v19 = vperm.slane %v576_v16, %v5256_v13 }
 0x19c   :  { %v599_v21 = vrot.slane %v572_v17, 4  ;;  %v597_v22 = vrot.slane %v584_v19, 4 }
 0x19e   :  { %v5434_v23 = vsel %vm110_vm0, %v584_v19, %v599_v21  ;;  %v5437_v24 = vsel %vm110_vm0, %v597_v22, %v572_v17 }
 0x1a0   :  { %v5441_v25 = vpop.permute.xlu0 %415 }
 0x1a8   :  { %v5443_v30 = vpop.permute.xlu0 %277 }
 0x1bd   :  { %409 = vrot.lane.b32.xlu2 %v5334_v20, %s5139_s27  ;;  %s4798_s27 = sshll.u32 %s6207_s16, 4  ;;  %s4799_s27 = int_to_ptr.hbm [resolvable:$true] %s4798_s27 }
 0x1ed   :  { %v4873_v27 = vpop.trf.xlu2 }
 0x1ee   :  { %v4874_v32 = vunpack.i.l.bf16 %v4873_v27  ;;  %v4877_v41 = vunpack.i.h.bf16 %v4873_v27 }
 0x1f0   :  { %v995_v34 = vrot.slane %v4874_v32, 4  ;;  %v1021_v50 = vrot.slane %v4877_v41, 4 }
 0x1fc   :  { %v4880_v33 = vpop.trf.xlu0 }
 0x1fd   :  { %v4884_v35 = vunpack.i.h.bf16 %v4880_v33  ;;  %v4881_v37 = vunpack.i.l.bf16 %v4880_v33 }
 0x1ff   :  { %v997_v38 = vrot.slane %v4884_v35, 4  ;;  %v985_v39 = vrot.slane %v4881_v37, 4  ;;  %v4866_v40 = vpop.trf.xlu1  ;;  %v996_v44 = vsel %vm110_vm0, %v995_v34, %v4884_v35  ;;  %v481_v34 = vrot.slane %v5441_v25, 4 }
 0x200   :  { %v4870_v42 = vunpack.i.h.bf16 %v4866_v40  ;;  %v4867_v43 = vunpack.i.l.bf16 %v4866_v40  ;;  %v1002_v52 = vperm.slane %v996_v44, %v5256_v13 }
 0x201   :  { %v998_v45 = vsel %vm110_vm0, %v4874_v32, %v997_v38 }
 0x202   :  { %v983_v46 = vrot.slane %v4867_v43, 4  ;;  %v986_v47 = vsel %vm110_vm0, %v4867_v43, %v985_v39  ;;  %v1006_v48 = vperm.slane %v998_v45, %v5256_v13  ;;  %v1009_v18 = vrot.slane %v4870_v42, 4 }
 0x203   :  { %v994_v49 = vperm.slane %v986_v47, %v5256_v13  ;;  %v1031_v61 = vrot.slane %v1002_v52, 4 }
 0x204   :  { %v984_v51 = vsel %vm110_vm0, %v983_v46, %v4881_v37  ;;  %v1043_v53 = vrot.slane %v1006_v48, 4  ;;  %v4887_v54 = vpop.trf.xlu0 }
 0x205   :  { %v990_v55 = vperm.slane %v984_v51, %v5256_v13  ;;  %v1045_v56 = vrot.slane %v994_v49, 4  ;;  %v4891_v57 = vunpack.i.h.bf16 %v4887_v54  ;;  %v4888_v58 = vunpack.i.l.bf16 %v4887_v54 }
 0x206   :  { %v1044_v59 = vsel %vm110_vm0, %v1043_v53, %v994_v49  ;;  %v482_v51 = vsel %vm110_vm0, %v481_v34, %v5334_v20 }
 0x207   :  { %v1033_v62 = vrot.slane %v990_v55, 4  ;;  %v1019_v63 = vrot.slane %v4891_v57, 4  ;;  %v1022_v0 = vsel %vm110_vm0, %v4891_v57, %v1021_v50  ;;  %v1046_v1 = vsel %vm110_vm0, %v1006_v48, %v1045_v56 }
 0x208   :  { %v1030_v3 = vperm.slane %v1022_v0, %v5256_v13  ;;  %v1007_v4 = vrot.slane %v4888_v58, 4  ;;  %v1010_v5 = vsel %vm110_vm0, %v4888_v58, %v1009_v18  ;;  %v1054_v9 = vperm.slane %v1046_v1, %v5275_v36 }
 0x209   :  { %v1020_v10 = vsel %vm110_vm0, %v1019_v63, %v4877_v41  ;;  %v1018_v14 = vperm.slane %v1010_v5, %v5256_v13  ;;  %v1034_v16 = vsel %vm110_vm0, %v1002_v52, %v1033_v62  ;;  %v5463_v17 = vperm.slane %v1044_v59, %v5275_v36 }
 0x20a   :  { %v1008_v19 = vsel %vm110_vm0, %v1007_v4, %v4870_v42  ;;  %v1042_v21 = vperm.slane %v1034_v16, %v5275_v36  ;;  %v1026_v22 = vperm.slane %v1020_v10, %v5256_v13  ;;  %v1067_v33 = vrot.slane %v1030_v3, 4 }
 0x20b   :  { %v1014_v27 = vperm.slane %v1008_v19, %v5256_v13  ;;  %v1069_v32 = vrot.slane %v1018_v14, 4  ;;  %v1093_v35 = vrot.slane %v1054_v9, 4  ;;  %v1089_v37 = vrot.slane %v5463_v17, 4 }
 0x20c   :  { %v1032_v38 = vsel %vm110_vm0, %v1031_v61, %v990_v55  ;;  %v1068_v41 = vsel %vm110_vm0, %v1067_v33, %v1018_v14  ;;  %v1055_v42 = vrot.slane %v1026_v22, 4  ;;  %v1085_v44 = vrot.slane %v1042_v21, 4 }
 0x20d   :  { %v1057_v39 = vrot.slane %v1014_v27, 4  ;;  %v1070_v40 = vsel %vm110_vm0, %v1030_v3, %v1069_v32  ;;  %v5476_v45 = vperm.slane %v1068_v41, %v5275_v36  ;;  %v5479_v46 = vperm.slane %v1032_v38, %v5275_v36 }
 0x20e   :  { %v1078_v43 = vperm.slane %v1070_v40, %v5275_v36  ;;  %v1056_v52 = vsel %vm110_vm0, %v1055_v42, %v1014_v27  ;;  %v488_v61 = vperm.slane %v482_v51, %v5256_v13  ;;  %v493_v62 = vrot.slane %v5417_v7, 4 }
 0x20f   :  { %v1058_v47 = vsel %vm110_vm0, %v1026_v22, %v1057_v39  ;;  %v1090_v50 = vsel %vm110_vm0, %v5476_v45, %v1089_v37  ;;  %v1081_v55 = vrot.slane %v5479_v46, 4  ;;  %v1062_v59 = vperm.slane %v1056_v52, %v5275_v36 }
 0x210   :  { %v1066_v48 = vperm.slane %v1058_v47, %v5275_v36  ;;  %v1094_v49 = vsel %vm110_vm0, %v1078_v43, %v1093_v35  ;;  %v1091_v18 = vrot.slane %v1078_v43, 4  ;;  %v483_v3 = vrot.slane %v5334_v20, 4 }
 0x211   :  { %v1082_v63 = vsel %vm110_vm0, %v1062_v59, %v1081_v55  ;;  %v507_v16 = vrot.slane %v488_v61, 4  ;;  %v561_v39 = vrot.slane %v5423_v11, 4  ;;  %v1079_v51 = vrot.slane %v1062_v59, 4 }
 0x212   :  { %v1086_v53 = vsel %vm110_vm0, %v1066_v48, %v1085_v44  ;;  %v1092_v54 = vsel %vm110_vm0, %v1091_v18, %v1054_v9  ;;  %v1083_v56 = vrot.slane %v1066_v48, 4  ;;  %v573_v9 = vrot.slane %v5425_v12, 4 }
 0x213   :  { %v4892_v57 = vpack.i.bf16 %v1086_v53, %v1094_v49  ;;  %v4899_v58 = vpack.i.bf16 %v1092_v54, %v1090_v50  ;;  %v484_v19 = vsel %vm110_vm0, %v5441_v25, %v483_v3  ;;  %v562_v50 = vsel %vm110_vm0, %v561_v39, %v5415_v6 }
 0x214   :  { %v1084_v0 = vsel %vm110_vm0, %v1083_v56, %v1042_v21  ;;  %v574_v12 = vsel %vm110_vm0, %v573_v9, %v5419_v8  ;;  %v492_v34 = vperm.slane %v484_v19, %v5256_v13  ;;  %v1087_v11 = vrot.slane %v5476_v45, 4 }
 0x215   :  { %4893 = vxpose.xlu2.b32.start.end [1/1] (short) (narrow) %v4892_v57, 8  ;;  %4900 = vxpose.xlu0.b32.start.end [1/1] (short) (narrow) %v4899_v58, 8  ;;  %v4906_v14 = vpack.i.bf16 %v1084_v0, %v1082_v63  ;;  %v580_v41 = vperm.slane %v574_v12, %v5256_v13  ;;  %v568_v57 = vperm.slane %v562_v50, %v5256_v13 }
 0x216   :  { %v519_v47 = vrot.slane %v492_v34, 4  ;;  %v1080_v6 = vsel %vm110_vm0, %v1079_v51, %v5479_v46  ;;  %v1088_v58 = vsel %vm110_vm0, %v1087_v11, %v5463_v17  ;;  %v608_v0 = vperm.slane %v5434_v23, %v5275_v36 }
 0x217   :  { %v5497_v1 = vpop.permute.xlu2 %409  ;;  %v585_v54 = vrot.slane %v580_v41, 4  ;;  %v587_v3 = vrot.slane %v568_v57, 4 }
 0x218   :  { %v494_v4 = vsel %vm110_vm0, %v493_v62, %v5497_v1  ;;  %v495_v5 = vrot.slane %v5497_v1, 4 }
 0x219   :  { %v500_v10 = vperm.slane %v494_v4, %v5256_v13  ;;  %v586_v59 = vsel %vm110_vm0, %v585_v54, %v568_v57  ;;  %v588_v17 = vsel %vm110_vm0, %v580_v41, %v587_v3 }
 0x21a   :  { %v496_v21 = vsel %vm110_vm0, %v5417_v7, %v495_v5  ;;  %v592_v62 = vperm.slane %v586_v59, %v5275_v36  ;;  %v604_v5 = vperm.slane %v5437_v24, %v5275_v36  ;;  %v596_v9 = vperm.slane %v588_v17, %v5275_v36 }
 0x21b   :  { %v504_v22 = vperm.slane %v496_v21, %v5256_v13  ;;  %v505_v27 = vrot.slane %v500_v10, 4  ;;  %v508_v32 = vsel %vm110_vm0, %v500_v10, %v507_v16 }
 0x21c   :  { %v516_v33 = vperm.slane %v508_v32, %v5275_v36  ;;  %v609_v10 = vrot.slane %v592_v62, 4  ;;  %v611_v16 = vrot.slane %v596_v9, 4 }
 0x21d   :  { %4907 = vxpose.xlu2.b32.start.end [1/1] (short) (narrow) %v4906_v14, 8  ;;  %v517_v35 = vrot.slane %v504_v22, 4  ;;  %v506_v37 = vsel %vm110_vm0, %v505_v27, %v488_v61  ;;  %v520_v55 = vsel %vm110_vm0, %v504_v22, %v519_v47  ;;  %v4934_v61 = vpack.i.bf16 %v1080_v6, %v1088_v58 }
 0x21e   :  { %v512_v38 = vperm.slane %v506_v37, %v5275_v36  ;;  %v531_v44 = vrot.slane %v516_v33, 4  ;;  %v528_v45 = vperm.slane %v520_v55, %v5275_v36  ;;  %v615_v14 = vrot.slane %v608_v0, 4 }
 0x21f   :  { %v518_v40 = vsel %vm110_vm0, %v517_v35, %v492_v34  ;;  %v610_v23 = vsel %vm110_vm0, 0.0, %v609_v10  ;;  %v612_v21 = vsel %vm110_vm0, 0.0, %v611_v16  ;;  %v613_v22 = vrot.slane %v604_v5, 4 }
 0x220   :  { %v524_v42 = vperm.slane %v518_v40, %v5275_v36  ;;  %v529_v43 = vrot.slane %v512_v38, 4  ;;  %v532_v52 = vsel %vm110_vm0, 0.0, %v531_v44  ;;  %v535_v63 = vrot.slane %v528_v45, 4 }
 0x221   :  { %v616_v19 = vsel %vm110_vm0, 0.0, %v615_v14  ;;  %v614_v24 = vsel %vm110_vm0, 0.0, %v613_v22 }
 0x222   :  { %v4920_v8 = vpack.i.bf16 %v524_v42, %v516_v33  ;;  %v530_v48 = vsel %vm110_vm0, 0.0, %v529_v43  ;;  %v533_v49 = vrot.slane %v524_v42, 4  ;;  %v536_v46 = vsel %vm110_vm0, 0.0, %v535_v63 }
 0x223   :  { %v4913_v18 = vpack.i.bf16 %v530_v48, %v512_v38  ;;  %v4941_v4 = vpack.i.bf16 %v536_v46, %v528_v45 }
 0x224   :  { %4921 = vxpose.xlu0.b32.start.end [1/1] (short) (narrow) %v4920_v8, 8  ;;  %v534_v53 = vsel %vm110_vm0, 0.0, %v533_v49 }
 0x225   :  { %4914 = vxpose.xlu2.b32.start.end [1/1] (short) (narrow) %v4913_v18, 8  ;;  %v4927_v56 = vpack.i.bf16 %v534_v53, %v532_v52 }
 0x227   :  { %4928 = vxpose.xlu1.b32.start.end [1/1] (short) (narrow) %v4927_v56, 8 }
 0x22c   :  { %4935 = vxpose.xlu0.b32.start.end [1/1] (short) (narrow) %v4934_v61, 8 }
 0x22d   :  { %1544 = vxpose.xlu2.b32.start.end [1/1] (short) (narrow) %v592_v62, 8 }
 0x22f   :  { %1736 = vxpose.xlu1.b32.start.end [1/1] (short) (narrow) %v608_v0, 8 }
 0x234   :  { %4942 = vxpose.xlu0.b32.start.end [1/1] (short) (narrow) %v4941_v4, 8 }
 0x235   :  { %1672 = vxpose.xlu2.b32.start.end [1/1] (short) (narrow) %v604_v5, 8 }
 0x237   :  { %1608 = vxpose.xlu1.b32.start.end [1/1] (short) (narrow) %v596_v9, 8 }
 0x23c   :  { %1576 = vxpose.xlu0.b32.start.end [1/1] (short) (narrow) %v610_v23, 8 }
 0x23d   :  { %1768 = vxpose.xlu2.b32.start.end [1/1] (short) (narrow) %v616_v19, 8 }
 0x23f   :  { %1640 = vxpose.xlu1.b32.start.end [1/1] (short) (narrow) %v612_v21, 8 }
 0x247   :  { %1704 = vxpose.xlu1.b32.start.end [1/1] (short) (narrow) %v614_v24, 8 }
 0x2ae   :  { %v4894_v27 = vpop.trf.xlu2 }
 0x2af   :  { %v4898_v34 = vunpack.i.h.bf16 %v4894_v27  ;;  %v4895_v37 = vunpack.i.l.bf16 %v4894_v27 }
 0x2b1   :  { %v1357_v38 = vrot.slane %v4898_v34, 4  ;;  %v1369_v42 = vrot.slane %v4895_v37, 4 }
 0x2b6   :  { %v4908_v32 = vpop.trf.xlu2 }
 0x2b7   :  { %v4909_v39 = vunpack.i.l.bf16 %v4908_v32  ;;  %v4912_v8 = vunpack.i.h.bf16 %v4908_v32 }
 0x2b9   :  { %v4901_v33 = vpop.trf.xlu0  ;;  %v1358_v48 = vsel %vm110_vm0, %v1357_v38, %v4909_v39  ;;  %v1351_v58 = vrot.slane %v4912_v8, 4 }
 0x2ba   :  { %v4902_v44 = vunpack.i.l.bf16 %v4901_v33  ;;  %v4905_v11 = vunpack.i.h.bf16 %v4901_v33  ;;  %v1362_v45 = vperm.slane %v1358_v48, %v5256_v13 }
 0x2bc   :  { %v1370_v53 = vsel %vm110_vm0, %v1369_v42, %v4902_v44  ;;  %v1363_v62 = vrot.slane %v4905_v11, 4  ;;  %v1375_v23 = vrot.slane %v1362_v45, 4 }
 0x2bd   :  { %v1374_v63 = vperm.slane %v1370_v53, %v5256_v13 }
 0x2be   :  { %v4915_v12 = vpop.trf.xlu2 }
 0x2bf   :  { %v4916_v35 = vunpack.i.l.bf16 %v4915_v12  ;;  %v4919_v40 = vunpack.i.h.bf16 %v4915_v12  ;;  %v1387_v32 = vrot.slane %v1374_v63, 4 }
 0x2c1   :  { %v2824_v41 = vrot.slane %v4916_v35, 4  ;;  %v2836_v49 = vrot.slane %v4919_v40, 4 }
 0x2c6   :  { %v5557_v55 = vpop.trf.xlu2 }
 0x2c8   :  { %v5547_v43 = vpop.trf.xlu0 }
 0x2c9   :  { %v4923_v47 = vunpack.i.l.bf16 %v5547_v43  ;;  %v4926_v19 = vunpack.i.h.bf16 %v5547_v43 }
 0x2cb   :  { %v2822_v50 = vrot.slane %v4923_v47, 4  ;;  %v2825_v18 = vsel %vm110_vm0, %v4923_v47, %v2824_v41  ;;  %v4929_v51 = vpop.trf.xlu1 }
 0x2cc   :  { %v5553_v52 = vperm.slane %v2825_v18, %v5256_v13  ;;  %v4930_v56 = vunpack.i.l.bf16 %v4929_v51  ;;  %v4933_v21 = vunpack.i.h.bf16 %v4929_v51 }
 0x2cd   :  { %v2823_v54 = vsel %vm110_vm0, %v2822_v50, %v4916_v35  ;;  %v1802_v35 = vrot.slane %v5557_v55, 4 }
 0x2ce   :  { %v5560_v57 = vperm.slane %v2823_v54, %v5256_v13  ;;  %v2884_v6 = vrot.slane %v5553_v52, 4  ;;  %v2834_v59 = vrot.slane %v4930_v56, 4  ;;  %v2837_v61 = vsel %vm110_vm0, %v4930_v56, %v2836_v49  ;;  %v1688_v37 = vpop.trf.xlu2 }
 0x2cf   :  { %v5568_v3 = vperm.slane %v2837_v61, %v5256_v13  ;;  %v2860_v41 = vrot.slane %v4933_v21, 4  ;;  %v1826_v48 = vrot.slane %v1688_v37, 4 }
 0x2d0   :  { %v2872_v0 = vrot.slane %v5560_v57, 4  ;;  %v4936_v46 = vpop.trf.xlu0  ;;  %v2835_v4 = vsel %vm110_vm0, %v2834_v59, %v4919_v40  ;;  %v2848_v40 = vrot.slane %v4926_v19, 4 }
 0x2d1   :  { %v4940_v17 = vunpack.i.h.bf16 %v4936_v46  ;;  %v5572_v5 = vperm.slane %v2835_v4, %v5256_v13  ;;  %v4937_v9 = vunpack.i.l.bf16 %v4936_v46  ;;  %v2885_v10 = vsel %vm110_vm0, %v5568_v3, %v2884_v6 }
 0x2d2   :  { %v5590_v18 = vperm.slane %v2885_v10, %v5275_v36  ;;  %v2882_v51 = vrot.slane %v5568_v3, 4 }
 0x2d3   :  { %v1352_v14 = vsel %vm110_vm0, %v1351_v58, %v4940_v17  ;;  %v1752_v16 = vpop.trf.xlu1  ;;  %v1364_v22 = vsel %vm110_vm0, %v1363_v62, %v4937_v9  ;;  %v2873_v33 = vsel %vm110_vm0, %v5572_v5, %v2872_v0 }
 0x2d4   :  { %v1356_v24 = vperm.slane %v1352_v14, %v5256_v13  ;;  %v1368_v27 = vperm.slane %v1364_v22, %v5256_v13  ;;  %v1824_v6 = vrot.slane %v1752_v16, 4  ;;  %v1827_v46 = vsel %vm110_vm0, %v1752_v16, %v1826_v48 }
 0x2d5   :  { %v5605_v17 = vperm.slane %v2873_v33, %v5275_v36  ;;  %v2932_v9 = vrot.slane %v5590_v18, 4  ;;  %v2883_v22 = vsel %vm110_vm0, %v2882_v51, %v5553_v52 }
 0x2d6   :  { %v1376_v12 = vsel %vm110_vm0, %v1375_v23, %v1356_v24  ;;  %v1377_v34 = vrot.slane %v1356_v24, 4  ;;  %v1388_v39 = vsel %vm110_vm0, %v1387_v32, %v1368_v27  ;;  %v1389_v8 = vrot.slane %v1368_v27, 4 }
 0x2d7   :  { %v1382_v38 = vperm.slane %v1376_v12, %v5275_v36  ;;  %v1394_v43 = vperm.slane %v1388_v39, %v5275_v36 }
 0x2d8   :  { %v4943_v42 = vpop.trf.xlu0  ;;  %v1378_v44 = vsel %vm110_vm0, %v1362_v45, %v1377_v34  ;;  %v1390_v3 = vsel %vm110_vm0, %v1374_v63, %v1389_v8  ;;  %v1825_v63 = vsel %vm110_vm0, %v1824_v6, %v1688_v37  ;;  %v2889_v37 = vperm.slane %v2883_v22, %v5275_v36 }
 0x2d9   :  { %v4947_v47 = vunpack.i.h.bf16 %v4943_v42  ;;  %v4944_v49 = vunpack.i.l.bf16 %v4943_v42  ;;  %v1399_v50 = vrot.slane %v1394_v43, 4  ;;  %v1401_v56 = vrot.slane %v1382_v38, 4 }
 0x2da   :  { %v1386_v59 = vperm.slane %v1378_v44, %v5275_v36  ;;  %v1398_v16 = vperm.slane %v1390_v3, %v5275_v36  ;;  %v1784_v44 = vpop.trf.xlu2  ;;  %v2870_v8 = vrot.slane %v5572_v5, 4  ;;  %v2928_v51 = vrot.slane %v2889_v37, 4 }
 0x2db   :  { %v2858_v11 = vrot.slane %v4947_v47, 4  ;;  %v2861_v53 = vsel %vm110_vm0, %v4947_v47, %v2860_v41  ;;  %v5594_v54 = vpop.trf.xlu1  ;;  %v2846_v58 = vrot.slane %v4944_v49, 4  ;;  %v2849_v45 = vsel %vm110_vm0, %v4944_v49, %v2848_v40 }
 0x2dc   :  { %v2857_v62 = vperm.slane %v2849_v45, %v5256_v13  ;;  %v1400_v0 = vsel %vm110_vm0, %v1399_v50, %v1382_v38  ;;  %v2869_v10 = vperm.slane %v2861_v53, %v5256_v13  ;;  %v1800_v27 = vrot.slane %v5594_v54, 4 }
 0x2dd   :  { %v2859_v61 = vsel %vm110_vm0, %v2858_v11, %v4933_v21  ;;  %v2847_v4 = vsel %vm110_vm0, %v2846_v58, %v4926_v19  ;;  %1426 = vmatpush.msra.mxu2 %v1400_v0  ;;  %v1402_v21 = vsel %vm110_vm0, %v1394_v43, %v1401_v56  ;;  %v1405_v19 = vrot.slane %v1386_v59, 4 }
 0x2de   :  { %v2853_v14 = vperm.slane %v2847_v4, %v5256_v13  ;;  %v2908_v23 = vrot.slane %v2857_v62, 4  ;;  %4816 = vmatmul.msk.f32.vlgmr.msra.gmra.mxu2 %vm1407_vm2, %v5389_v31  ;;  %1449 = vmatpush.msra.mxu3 %v1402_v21  ;;  %v2865_v24 = vperm.slane %v2859_v61, %v5256_v13  ;;  %v1403_v31 = vrot.slane %v1398_v16, 4 }
 0x2df   :  { %4817 = vmatmul.msk.f32.vlgmr.msra.gmra.mxu3 %vm1407_vm2, %v5380_v28  ;;  %v1406_v12 = vsel %vm110_vm0, %v1398_v16, %v1405_v19  ;;  %v5626_v38 = vperm.slane %v1825_v63, %v5256_v13  ;;  %v2924_v40 = vrot.slane %v5605_v17, 4  ;;  %v2906_v28 = vrot.slane %v2869_v10, 4 }
 0x2e0   :  { %v2896_v32 = vrot.slane %v2853_v14, 4  ;;  %v2909_v33 = vsel %vm110_vm0, %v2869_v10, %v2908_v23  ;;  %1495 = vmatpush.msrb.mxu3 %v1406_v12  ;;  %v1404_v41 = vsel %vm110_vm0, %v1403_v31, %v1386_v59  ;;  %v1592_v42 = vpop.trf.xlu0  ;;  %v1801_v48 = vsel %vm110_vm0, %v1800_v27, %v5557_v55 }
 0x2e1   :  { %v2917_v34 = vperm.slane %v2909_v33, %v5275_v36  ;;  %1472 = vmatpush.msrb.mxu2 %v1404_v41  ;;  %v2907_v50 = vsel %vm110_vm0, %v2906_v28, %v2857_v62  ;;  %v1814_v58 = vrot.slane %v1592_v42, 4  ;;  %v1836_v5 = vrot.slane %v1784_v44, 4 }
 0x2e2   :  { %v2897_v39 = vsel %vm110_vm0, %v2865_v24, %v2896_v32  ;;  %v2913_v56 = vperm.slane %v2907_v50, %v5275_v36  ;;  %v2894_v59 = vrot.slane %v2865_v24, 4  ;;  %v1807_v61 = vperm.slane %v1801_v48, %v5256_v13 }
 0x2e3   :  { %v1656_v52 = vpop.trf.xlu1  ;;  %v2905_v47 = vperm.slane %v2897_v39, %v5275_v36  ;;  %v5636_v49 = vsel %vm110_vm0, %v2917_v34, %v2932_v9  ;;  %v2930_v6 = vrot.slane %v2917_v34, 4  ;;  %v2871_v3 = vsel %vm110_vm0, %v2870_v8, %v5560_v57 }
 0x2e4   :  { %v1812_v43 = vrot.slane %v1656_v52, 4  ;;  %v5650_v62 = vsel %vm110_vm0, %v2913_v56, %v2928_v51  ;;  %v1835_v10 = vperm.slane %v1827_v46, %v5256_v13  ;;  %v2877_v23 = vperm.slane %v2871_v3, %v5275_v36 }
 0x2e5   :  { %v5641_v53 = vsel %vm110_vm0, %v2905_v47, %v2924_v40  ;;  %v5654_v0 = vsel %vm110_vm0, %v2930_v6, %v5590_v18  ;;  %v1874_v18 = vrot.slane %v5626_v38, 4  ;;  %v1815_v57 = vsel %vm110_vm0, %v1656_v52, %v1814_v58 }
 0x2e6   :  { %v1813_v11 = vsel %vm110_vm0, %v1812_v43, %v1592_v42  ;;  %4818 = vmatmul.msk.f32.vlgmr.msrb.gmra.mxu2 %vm1407_vm2, %v5383_v29  ;;  %v4948_v45 = vpack.i.bf16 %v5641_v53, %v5636_v49  ;;  %v1803_v29 = vsel %vm110_vm0, %v5594_v54, %v1802_v35  ;;  %v4955_v9 = vpack.i.bf16 %v5654_v0, %v5650_v62 }
 0x2e7   :  { %v1819_v4 = vperm.slane %v1813_v11, %v5256_v13  ;;  %4819 = vmatmul.msk.f32.vlgmr.msrb.gmra.mxu3 %vm1407_vm2, %v5377_v26  ;;  %v2895_v21 = vsel %vm110_vm0, %v2894_v59, %v2853_v14  ;;  %v2922_v35 = vrot.slane %v2905_v47, 4  ;;  %v2926_v54 = vrot.slane %v2913_v56, 4 }
 0x2e8   :  { %v1811_v63 = vperm.slane %v1803_v29, %v5256_v13  ;;  %v1850_v16 = vrot.slane %v1807_v61, 4  ;;  %v2901_v24 = vperm.slane %v2895_v21, %v5275_v36  ;;  %v2920_v27 = vrot.slane %v2877_v23, 4 }
 0x2e9   :  { %v1848_v22 = vrot.slane %v1819_v4, 4  ;;  %v1823_v32 = vperm.slane %v1815_v57, %v5256_v13  ;;  %v5680_v14 = vsel %vm110_vm0, %v2922_v35, %v5605_v17  ;;  %v5683_v31 = vsel %vm110_vm0, %v2926_v54, %v2889_v37 }
 0x2ea   :  { %v1851_v52 = vsel %vm110_vm0, %v1819_v4, %v1850_v16  ;;  %v5688_v39 = vsel %vm110_vm0, %v2901_v24, %v2920_v27  ;;  %v2918_v41 = vrot.slane %v2901_v24, 4  ;;  %v1862_v42 = vrot.slane %v1811_v63, 4 }
 0x2eb   :  { %v1720_v55 = vpop.trf.xlu1  ;;  %v4962_v28 = vpack.i.bf16 %v5680_v14, %v5688_v39  ;;  %v1849_v37 = vsel %vm110_vm0, %v1848_v22, %v1807_v61  ;;  %v1886_v48 = vrot.slane %v1835_v10, 4 }
 0x2ec   :  { %v1837_v26 = vsel %vm110_vm0, %v1836_v5, %v1720_v55  ;;  %v1838_v19 = vrot.slane %v1720_v55, 4  ;;  %v1863_v50 = vsel %vm110_vm0, %v1823_v32, %v1862_v42  ;;  %v5701_v51 = vsel %vm110_vm0, %v2918_v41, %v2877_v23 }
 0x2ed   :  { %v1843_v46 = vperm.slane %v1837_v26, %v5256_v13  ;;  %v1855_v56 = vperm.slane %v1849_v37, %v5275_v36  ;;  %v1871_v59 = vperm.slane %v1863_v50, %v5275_v36  ;;  %v1860_v23 = vrot.slane %v1823_v32, 4 }
 0x2ee   :  { %v1839_v33 = vsel %vm110_vm0, %v1784_v44, %v1838_v19  ;;  %v1859_v44 = vperm.slane %v1851_v52, %v5275_v36 }
 0x2ef   :  { %v1872_v12 = vrot.slane %v1843_v46, 4  ;;  %v1875_v34 = vsel %vm110_vm0, %v1843_v46, %v1874_v18  ;;  %v1847_v17 = vperm.slane %v1839_v33, %v5256_v13  ;;  %v1910_v3 = vrot.slane %v1871_v59, 4 }
 0x2f0   :  { %v1883_v40 = vperm.slane %v1875_v34, %v5275_v36  ;;  %v1902_v4 = vrot.slane %v1859_v44, 4  ;;  %v1861_v21 = vsel %vm110_vm0, %v1860_v23, %v1811_v63  ;;  %v1898_v46 = vrot.slane %v1855_v56, 4 }
 0x2f1   :  { %v1873_v43 = vsel %vm110_vm0, %v1872_v12, %v5626_v38  ;;  %v1887_v58 = vsel %vm110_vm0, %v1847_v17, %v1886_v48  ;;  %v4969_v38 = vpack.i.bf16 %v5701_v51, %v5683_v31  ;;  %v1884_v55 = vrot.slane %v1847_v17, 4 }
 0x2f2   :  { %v1900_v47 = vrot.slane %v1883_v40, 4  ;;  %v1879_v8 = vperm.slane %v1873_v43, %v5275_v36  ;;  %v1895_v61 = vperm.slane %v1887_v58, %v5275_v36  ;;  %v1903_v18 = vsel %vm110_vm0, %v1883_v40, %v1902_v4 }
 0x2f3   :  { %v1885_v54 = vsel %vm110_vm0, %v1884_v55, %v1835_v10  ;;  %v1867_v16 = vperm.slane %v1861_v21, %v5275_v36 }
 0x2f4   :  { %v1901_v11 = vsel %vm110_vm0, %v1900_v47, %v1859_v44  ;;  %v1896_v6 = vrot.slane %v1879_v8, 4  ;;  %v1911_v29 = vsel %vm110_vm0, %v1895_v61, %v1910_v3  ;;  %v1908_v57 = vrot.slane %v1895_v61, 4 }
 0x2f5   :  { %1976 = vxpose.xlu1.b32.start.end [1/1] (short) (narrow) %v1901_v11, 8  ;;  %v1891_v26 = vperm.slane %v1885_v54, %v5275_v36  ;;  %v1906_v19 = vrot.slane %v1867_v16, 4  ;;  %v1899_v24 = vsel %vm110_vm0, %v1879_v8, %v1898_v46 }
 0x2f6   :  { %v1897_v5 = vsel %vm110_vm0, %v1896_v6, %v1855_v56  ;;  %v1909_v35 = vsel %vm110_vm0, %v1908_v57, %v1871_v59 }
 0x2f7   :  { %1912 = vxpose.xlu2.b32.start.end [1/1] (short) (narrow) %v1897_v5, 8  ;;  %v1907_v22 = vsel %vm110_vm0, %v1891_v26, %v1906_v19  ;;  %v1904_v27 = vrot.slane %v1891_v26, 4 }
 0x2f9   :  { %v1905_v63 = vsel %vm110_vm0, %v1904_v27, %v1867_v16 }
 0x2fd   :  { %2136 = vxpose.xlu1.b32.start.end [1/1] (short) (narrow) %v1911_v29, 8 }
 0x305   :  { %2008 = vxpose.xlu1.b32.start.end [1/1] (short) (narrow) %v1903_v18, 8 }
 0x30d   :  { %2104 = vxpose.xlu1.b32.start.end [1/1] (short) (narrow) %v1909_v35, 8 }
 0x315   :  { %2072 = vxpose.xlu1.b32.start.end [1/1] (short) (narrow) %v1907_v22, 8 }
 0x31d   :  { %1944 = vxpose.xlu1.b32.start.end [1/1] (short) (narrow) %v1899_v24, 8 }
 0x325   :  { %2040 = vxpose.xlu1.b32.start.end [1/1] (short) (narrow) %v1905_v63, 8 }
 0x361   :  { %v5721_v32 = vpop.f32.mrf.mxu2 }
 0x362   :  { %v5723_v33 = vpop.f32.mrf.mxu3  ;;  %v1500_v52 = vsel %vm1407_vm2, %v5721_v32, -inf }
 0x363   :  { %v1503_v10 = vsel %vm1407_vm2, %v5723_v33, -inf }
 0x368   :  { %1504 = vmax.xlane.f32.xlu2 %v1503_v10 }
 0x369   :  { %v1474_v12 = vpop.f32.mrf.mxu2 }
 0x36a   :  { %v1506_v34 = vsel %vm1407_vm2, %v1474_v12, -inf }
 0x36b   :  { %1507 = vmax.xlane.f32.xlu0 %v1506_v34 }
 0x380   :  { %283 = vrot.lane.b32.xlu2 %v5318_v15, %s5138_s25 }
 0x385   :  { %1501 = vmax.xlane.f32.xlu1 %v1500_v52 }
 0x390   :  { %v1928_v17 = vpop.trf.xlu2 }
 0x399   :  { %v1992_v40 = vpop.trf.xlu1 }
 0x39a   :  { %v2168_v42 = vrot.slane %v1992_v40, 4 }
 0x39c   :  { %v2169_v43 = vsel %vm110_vm0, %v2168_v42, %v1928_v17 }
 0x39d   :  { %v2173_v6 = vperm.slane %v2169_v43, %v5256_v13 }
 0x39f   :  { %v2194_v23 = vrot.slane %v2173_v6, 4 }
 0x3a1   :  { %v2152_v41 = vpop.trf.xlu1 }
 0x3a2   :  { %v2186_v47 = vrot.slane %v2152_v41, 4 }
 0x3a9   :  { %v2024_v37 = vpop.trf.xlu1 }
 0x3aa   :  { %v2174_v50 = vrot.slane %v2024_v37, 4 }
 0x3b1   :  { %v2120_v44 = vpop.trf.xlu1 }
 0x3b9   :  { %v2088_v8 = vpop.trf.xlu1 }
 0x3ba   :  { %v2187_v48 = vsel %vm110_vm0, %v2186_v47, %v2088_v8 }
 0x3bb   :  { %v2191_v49 = vperm.slane %v2187_v48, %v5256_v13 }
 0x3bd   :  { %v2204_v62 = vrot.slane %v2191_v49, 4 }
 0x3bf   :  { %4949 = vxpose.xlu1.b32.start.end [1/1] (short) (narrow) %v4948_v45, 8  ;;  %v2180_v45 = vrot.slane %v2120_v44, 4 }
 0x3c1   :  { %v1960_v11 = vpop.trf.xlu1 }
 0x3c2   :  { %v2175_v56 = vsel %vm110_vm0, %v2174_v50, %v1960_v11 }
 0x3c3   :  { %v2179_v58 = vperm.slane %v2175_v56, %v5256_v13 }
 0x3c5   :  { %v2192_v53 = vrot.slane %v2179_v58, 4 }
 0x3c7   :  { %4956 = vxpose.xlu1.b32.start.end [1/1] (short) (narrow) %v4955_v9, 8  ;;  %v2193_v5 = vsel %vm110_vm0, %v2192_v53, %v2173_v6 }
 0x3c8   :  { %v2199_v31 = vperm.slane %v2193_v5, %v5275_v36 }
 0x3c9   :  { %v2056_v0 = vpop.trf.xlu1 }
 0x3ca   :  { %v2181_v9 = vsel %vm110_vm0, %v2180_v45, %v2056_v0  ;;  %v2218_v16 = vrot.slane %v2199_v31, 4 }
 0x3cb   :  { %v2185_v59 = vperm.slane %v2181_v9, %v5256_v13 }
 0x3cd   :  { %v2205_v61 = vsel %vm110_vm0, %v2204_v62, %v2185_v59  ;;  %v2206_v29 = vrot.slane %v2185_v59, 4 }
 0x3ce   :  { %v2211_v18 = vperm.slane %v2205_v61, %v5275_v36 }
 0x3cf   :  { %4963 = vxpose.xlu1.b32.start.end [1/1] (short) (narrow) %v4962_v28, 8  ;;  %v2207_v57 = vsel %vm110_vm0, %v2191_v49, %v2206_v29 }
 0x3d0   :  { %v2215_v55 = vperm.slane %v2207_v57, %v5275_v36  ;;  %v2216_v51 = vrot.slane %v2211_v18, 4  ;;  %v5766_v19 = vsel %vm110_vm0, %v2211_v18, %v2218_v16 }
 0x3d2   :  { %v2220_v35 = vrot.slane %v2215_v55, 4  ;;  %v5762_v54 = vsel %vm110_vm0, %v2216_v51, %v2199_v31 }
 0x3d7   :  { %4970 = vxpose.xlu1.b32.start.end [1/1] (short) (narrow) %v4969_v38, 8  ;;  %v2195_v38 = vsel %vm110_vm0, %v2179_v58, %v2194_v23 }
 0x3d8   :  { %v2203_v21 = vperm.slane %v2195_v38, %v5275_v36 }
 0x3da   :  { %v2221_v26 = vsel %vm110_vm0, %v2220_v35, %v2203_v21  ;;  %v2222_v22 = vrot.slane %v2203_v21, 4 }
 0x3db   :  { %v1505_v24 = vpop.xlane.xlu2 %1504 }
 0x3dc   :  { %v5769_v46 = vsel %vm110_vm0, %v2215_v55, %v2222_v22  ;;  %v1513_v10 = vsub.f32 %v5723_v33, %v1505_v24 }
 0x3de   :  { %v1508_v14 = vpop.xlane.xlu0 %1507  ;;  %v1518_v34 = vmul.f32 1.442695, %v1513_v10 }
 0x3df   :  { %v1514_v39 = vsub.f32 %v1474_v12, %v1508_v14 }
 0x3e1   :  { %v1520_v28 = vmul.f32 1.442695, %v1514_v39 }
 0x3e3   :  { %4985 = vpow2.f32 %v1520_v28  ;;  %v5790_v33 = vpop.permute.xlu2 %283 }
 0x3e9   :  { %v4986_v3 = vpop.eup %4985 }
 0x3ea   :  { %v1530_v4 = vsel %vm1407_vm2, %v4986_v3, 0.0 }
 0x3eb   :  { %1531 = vadd.xlane.f32.xlu2 %v1530_v4 }
 0x3f8   :  { %v1502_v27 = vpop.xlane.xlu1 %1501 }
 0x3f9   :  { %v1512_v63 = vsub.f32 %v5721_v32, %v1502_v27  ;;  %v5784_v32 = vpop.f32.mrf.mxu3 }
 0x3fb   :  { %v1516_v12 = vmul.f32 1.442695, %v1512_v63 }
 0x3fd   :  { %4987 = vpow2.f32 %v1516_v12 }
 0x3fe   :  { %4989 = vpow2.f32 %v1518_v34 }
 0x403   :  { %v4988_v52 = vpop.eup %4987  ;;  %543 = vrot.lane.b32.xlu2 %v5497_v1, %s5141_s3  ;;  %v1509_v1 = vsel %vm1407_vm2, %v5784_v32, -inf }
 0x404   :  { %v1524_v40 = vsel %vm1407_vm2, %v4988_v52, 0.0  ;;  %v5776_v41 = vpop.eup %4989 }
 0x405   :  { %1525 = vadd.xlane.f32.xlu0 %v1524_v40  ;;  %v1527_v42 = vsel %vm1407_vm2, %v5776_v41, 0.0 }
 0x40d   :  { %1528 = vadd.xlane.f32.xlu0 %v1527_v42 }
 0x421   :  { %547 = vrot.lane.b32.xlu0 %v5441_v25, %s5141_s3 }
 0x429   :  { %539 = vrot.lane.b32.xlu0 %v5334_v20, %s5141_s3 }
 0x437   :  { %1510 = vmax.xlane.f32.xlu1 %v1509_v1 }
 0x450   :  { %289 = vrot.lane.b32.xlu1 %v5318_v15, %s5140_s28 }
 0x458   :  { %551 = vrot.lane.b32.xlu1 %v5417_v7, %s5141_s3 }
 0x45e   :  { %v1532_v17 = vpop.xlane.xlu2 %1531 }
 0x45f   :  { %4991 = vrcp.f32 %v1532_v17 }
 0x463   :  { %v4950_v25 = vpop.trf.xlu1 }
 0x464   :  { %v4954_v44 = vunpack.i.h.bf16 %v4950_v25  ;;  %v4951_v47 = vunpack.i.l.bf16 %v4950_v25 }
 0x465   :  { %v4992_v37 = vpop.eup %4991 }
 0x466   :  { %v1542_v43 = vmul.f32 %v4992_v37, %v4986_v3  ;;  %v3196_v8 = vrot.slane %v4954_v44, 4  ;;  %v3208_v48 = vrot.slane %v4951_v47, 4  ;;  %v349_v37 = vrot.slane %v5790_v33, 4 }
 0x467   :  { %v363_v44 = vrot.slane %v5443_v30, 4 }
 0x468   :  { %4824 = vmatpush.xpose.msk.msra.mxu0 %vm1407_vm2, %v1542_v43 }
 0x46b   :  { %v4957_v20 = vpop.trf.xlu1  ;;  %4825 = vmatmul.msk.f32.vlgmr.msra.gmra.mxu0 %vm1407_vm2, %v2221_v26 }
 0x46c   :  { %v4958_v50 = vunpack.i.l.bf16 %v4957_v20  ;;  %v4961_v6 = vunpack.i.h.bf16 %v4957_v20  ;;  %v350_v20 = vsel %vm110_vm0, %v349_v37, %v5318_v15 }
 0x46d   :  { %v356_v47 = vperm.slane %v350_v20, %v5256_v13 }
 0x46e   :  { %v3209_v49 = vsel %vm110_vm0, %v3208_v48, %v4958_v50  ;;  %v3202_v5 = vrot.slane %v4961_v6, 4 }
 0x46f   :  { %v3213_v62 = vperm.slane %v3209_v49, %v5256_v13 }
 0x471   :  { %v3226_v39 = vrot.slane %v3213_v62, 4 }
 0x473   :  { %v4964_v11 = vpop.trf.xlu1 }
 0x474   :  { %v4965_v56 = vunpack.i.l.bf16 %v4964_v11  ;;  %v4968_v58 = vunpack.i.h.bf16 %v4964_v11 }
 0x476   :  { %v3197_v7 = vsel %vm110_vm0, %v3196_v8, %v4965_v56  ;;  %v3190_v0 = vrot.slane %v4968_v58, 4 }
 0x477   :  { %v3201_v45 = vperm.slane %v3197_v7, %v5256_v13 }
 0x478   :  { %v1526_v53 = vpop.xlane.xlu0 %1525 }
 0x479   :  { %4993 = vrcp.f32 %v1526_v53  ;;  %v3214_v14 = vrot.slane %v3201_v45, 4 }
 0x47b   :  { %v4971_v9 = vpop.trf.xlu1 }
 0x47c   :  { %v4975_v59 = vunpack.i.h.bf16 %v4971_v9  ;;  %v4972_v61 = vunpack.i.l.bf16 %v4971_v9 }
 0x47e   :  { %v3191_v28 = vsel %vm110_vm0, %v3190_v0, %v4975_v59  ;;  %v3203_v3 = vsel %vm110_vm0, %v3202_v5, %v4972_v61 }
 0x47f   :  { %v4994_v29 = vpop.eup %4993  ;;  %v3195_v4 = vperm.slane %v3191_v28, %v5256_v13  ;;  %v3207_v18 = vperm.slane %v3203_v3, %v5256_v13 }
 0x480   :  { %v1540_v23 = vmul.f32 %v4994_v29, %v4988_v52  ;;  %v1529_v57 = vpop.xlane.xlu0 %1528 }
 0x481   :  { %4995 = vrcp.f32 %v1529_v57  ;;  %v3216_v55 = vrot.slane %v3195_v4, 4  ;;  %v3228_v31 = vrot.slane %v3207_v18, 4  ;;  %v3215_v51 = vsel %vm110_vm0, %v3214_v14, %v3195_v4 }
 0x482   :  { %4820 = vmatpush.xpose.msk.msra.mxu2 %vm1407_vm2, %v1540_v23  ;;  %v3221_v38 = vperm.slane %v3215_v51, %v5275_v36  ;;  %v3227_v21 = vsel %vm110_vm0, %v3226_v39, %v3207_v18 }
 0x483   :  { %v3217_v35 = vsel %vm110_vm0, %v3201_v45, %v3216_v55  ;;  %v3229_v16 = vsel %vm110_vm0, %v3213_v62, %v3228_v31  ;;  %v3233_v26 = vperm.slane %v3227_v21, %v5275_v36  ;;  %v544_v45 = vpop.permute.xlu2 %543 }
 0x484   :  { %v3225_v22 = vperm.slane %v3217_v35, %v5275_v36  ;;  %v3240_v24 = vrot.slane %v3221_v38, 4  ;;  %v3237_v63 = vperm.slane %v3229_v16, %v5275_v36  ;;  %v631_v39 = vrot.slane %v544_v45, 4 }
 0x485   :  { %4821 = vmatmul.msk.f32.vlgmr.msra.gmra.mxu2 %vm1407_vm2, %v5762_v54  ;;  %v3238_v27 = vrot.slane %v3233_v26, 4 }
 0x486   :  { %v3244_v10 = vrot.slane %v3225_v22, 4  ;;  %v3241_v42 = vsel %vm110_vm0, %v3233_v26, %v3240_v24  ;;  %v3242_v54 = vrot.slane %v3237_v63, 4 }
 0x487   :  { %v4996_v12 = vpop.eup %4995  ;;  %v3239_v34 = vsel %vm110_vm0, %v3238_v27, %v3221_v38 }
 0x488   :  { %v1541_v52 = vmul.f32 %v4996_v12, %v5776_v41  ;;  %v3245_v40 = vsel %vm110_vm0, %v3237_v63, %v3244_v10  ;;  %3264 = vmatpush.msrb.mxu2 %v3239_v34  ;;  %v5823_v1 = vsel %vm110_vm0, %v3242_v54, %v3225_v22  ;;  %v351_v41 = vrot.slane %v5318_v15, 4 }
 0x489   :  { %3333 = vmatpush.msra.mxu1 %v3245_v40  ;;  %v375_v15 = vrot.slane %v356_v47, 4 }
 0x48a   :  { %4822 = vmatpush.xpose.msk.msra.mxu3 %vm1407_vm2, %v1541_v52  ;;  %v352_v43 = vsel %vm110_vm0, %v5790_v33, %v351_v41 }
 0x48d   :  { %4823 = vmatmul.msk.f32.vlgmr.msra.gmra.mxu3 %vm1407_vm2, %v5766_v19  ;;  %v360_v19 = vperm.slane %v352_v43, %v5256_v13 }
 0x48e   :  { %3287 = vmatpush.msrb.mxu3 %v3241_v42 }
 0x48f   :  { %v387_v11 = vrot.slane %v360_v19, 4 }
 0x493   :  { %v5825_v17 = vpop.permute.xlu0 %547 }
 0x494   :  { %v617_v58 = vrot.slane %v5825_v17, 4 }
 0x49b   :  { %v540_v56 = vpop.permute.xlu0 %539 }
 0x49c   :  { %v618_v5 = vsel %vm110_vm0, %v617_v58, %v540_v56  ;;  %v619_v28 = vrot.slane %v540_v56, 4 }
 0x49d   :  { %v624_v3 = vperm.slane %v618_v5, %v5256_v13 }
 0x49e   :  { %v620_v58 = vsel %vm110_vm0, %v5825_v17, %v619_v28 }
 0x49f   :  { %v643_v24 = vrot.slane %v624_v3, 4  ;;  %v628_v17 = vperm.slane %v620_v58, %v5256_v13 }
 0x4aa   :  { %v5827_v25 = vpop.xlane.xlu1 %1510 }
 0x4c2   :  { %v290_v8 = vpop.permute.xlu1 %289 }
 0x4c3   :  { %v361_v48 = vrot.slane %v290_v8, 4  ;;  %v364_v50 = vsel %vm110_vm0, %v290_v8, %v363_v44 }
 0x4c4   :  { %v372_v6 = vperm.slane %v364_v50, %v5256_v13 }
 0x4c5   :  { %v362_v33 = vsel %vm110_vm0, %v361_v48, %v5443_v30 }
 0x4c6   :  { %v368_v7 = vperm.slane %v362_v33, %v5256_v13  ;;  %v385_v49 = vrot.slane %v372_v6, 4  ;;  %v388_v53 = vsel %vm110_vm0, %v372_v6, %v387_v11 }
 0x4c7   :  { %v396_v62 = vperm.slane %v388_v53, %v5275_v36 }
 0x4c8   :  { %v373_v0 = vrot.slane %v368_v7, 4  ;;  %v376_v9 = vsel %vm110_vm0, %v368_v7, %v375_v15  ;;  %v386_v59 = vsel %vm110_vm0, %v385_v49, %v360_v19 }
 0x4c9   :  { %v384_v61 = vperm.slane %v376_v9, %v5275_v36  ;;  %v392_v30 = vperm.slane %v386_v59, %v5275_v36  ;;  %v403_v14 = vrot.slane %v396_v62, 4 }
 0x4ca   :  { %v374_v29 = vsel %vm110_vm0, %v373_v0, %v356_v47  ;;  %v552_v4 = vpop.permute.xlu1 %551 }
 0x4cb   :  { %v380_v18 = vperm.slane %v374_v29, %v5275_v36  ;;  %v399_v23 = vrot.slane %v384_v61, 4  ;;  %v401_v57 = vrot.slane %v392_v30, 4  ;;  %v404_v55 = vsel %vm110_vm0, 0.0, %v403_v14 }
 0x4cc   :  { %v2523_v31 = vsel %vm110_vm0, %v403_v14, %v392_v30  ;;  %v2528_v51 = vrot.slane %v404_v55, 4  ;;  %v629_v38 = vrot.slane %v552_v4, 4  ;;  %v632_v21 = vsel %vm110_vm0, %v552_v4, %v631_v39 }
 0x4cd   :  { %v397_v35 = vrot.slane %v380_v18, 4  ;;  %v400_v16 = vsel %vm110_vm0, 0.0, %v399_v23  ;;  %v402_v26 = vsel %vm110_vm0, 0.0, %v401_v57  ;;  %v2527_v22 = vperm.slane %v2523_v31, %v5256_v13 }
 0x4ce   :  { %v2517_v27 = vrot.slane %v400_v16, 4  ;;  %v2529_v63 = vsel %vm110_vm0, %v2528_v51, %v402_v26  ;;  %v630_v10 = vsel %vm110_vm0, %v629_v38, %v544_v45  ;;  %v2512_v40 = vsel %vm110_vm0, %v399_v23, %v380_v18 }
 0x4cf   :  { %v398_v12 = vsel %vm110_vm0, 0.0, %v397_v35  ;;  %v2533_v34 = vperm.slane %v2529_v63, %v5256_v13  ;;  %v636_v52 = vperm.slane %v630_v10, %v5256_v13  ;;  %v640_v42 = vperm.slane %v632_v21, %v5256_v13 }
 0x4d0   :  { %v2516_v54 = vperm.slane %v2512_v40, %v5256_v13  ;;  %v2518_v41 = vsel %vm110_vm0, %v2517_v27, %v398_v12  ;;  %v2548_v37 = vrot.slane %v2527_v22, 4  ;;  %v655_v57 = vrot.slane %v628_v17, 4 }
 0x4d1   :  { %v641_v43 = vrot.slane %v636_v52, 4  ;;  %v644_v20 = vsel %vm110_vm0, %v636_v52, %v643_v24  ;;  %v2522_v19 = vperm.slane %v2518_v41, %v5256_v13  ;;  %v2546_v44 = vrot.slane %v2533_v34, 4 }
 0x4d2   :  { %v652_v47 = vperm.slane %v644_v20, %v5275_v36  ;;  %v2536_v8 = vrot.slane %v2516_v54, 4  ;;  %v2549_v48 = vsel %vm110_vm0, %v2533_v34, %v2548_v37  ;;  %v653_v49 = vrot.slane %v640_v42, 4 }
 0x4d3   :  { %v642_v50 = vsel %vm110_vm0, %v641_v43, %v624_v3  ;;  %v2534_v11 = vrot.slane %v2522_v19, 4  ;;  %v2547_v56 = vsel %vm110_vm0, %v2546_v44, %v2527_v22  ;;  %v2557_v6 = vperm.slane %v2549_v48, %v5275_v36 }
 0x4d4   :  { %3446 = vxpose.xlu1.b32.start.end [1/1] (short) (narrow) %v652_v47, 8  ;;  %v648_v33 = vperm.slane %v642_v50, %v5275_v36  ;;  %v2553_v15 = vperm.slane %v2547_v56, %v5275_v36  ;;  %v2537_v7 = vsel %vm110_vm0, %v2522_v19, %v2536_v8  ;;  %v654_v28 = vsel %vm110_vm0, %v653_v49, %v628_v17 }
 0x4d5   :  { %v2535_v53 = vsel %vm110_vm0, %v2534_v11, %v2516_v54  ;;  %v2545_v45 = vperm.slane %v2537_v7, %v5275_v36  ;;  %v2562_v59 = vrot.slane %v2557_v6, 4  ;;  %v660_v4 = vperm.slane %v654_v28, %v5275_v36 }
 0x4d6   :  { %3382 = vxpose.xlu0.b32.start.end [1/1] (short) (narrow) %v648_v33, 8  ;;  %v665_v5 = vrot.slane %v648_v33, 4  ;;  %v2541_v62 = vperm.slane %v2535_v53, %v5275_v36  ;;  %v2558_v0 = vrot.slane %v2553_v15, 4  ;;  %v667_v18 = vrot.slane %v652_v47, 4 }
 0x4d7   :  { %v2564_v9 = vrot.slane %v2545_v45, 4  ;;  %v2563_v3 = vsel %vm110_vm0, %v2562_v59, %v2545_v45  ;;  %v656_v55 = vsel %vm110_vm0, %v640_v42, %v655_v57  ;;  %v1515_v21 = vsub.f32 %v5784_v32, %v5827_v25 }
 0x4d8   :  { %v666_v61 = vsel %vm110_vm0, 0.0, %v665_v5  ;;  %v2559_v30 = vsel %vm110_vm0, %v2558_v0, %v2541_v62  ;;  %v2560_v14 = vrot.slane %v2541_v62, 4  ;;  %v668_v23 = vsel %vm110_vm0, 0.0, %v667_v18 }
 0x4d9   :  { %3414 = vxpose.xlu2.b32.start.end [1/1] (short) (narrow) %v666_v61, 8  ;;  %4828 = vmatmul.msk.f32.vlgmr.msrb.gmra.mxu2 %vm1407_vm2, %v2559_v30  ;;  %v2565_v39 = vsel %vm110_vm0, %v2557_v6, %v2564_v9  ;;  %v664_v31 = vperm.slane %v656_v55, %v5275_v36  ;;  %v1522_v35 = vmul.f32 1.442695, %v1515_v21  ;;  %v669_v22 = vrot.slane %v660_v4, 4 }
 0x4da   :  { %4831 = vmatmul.msk.f32.vlgmr.msra.gmra.mxu1 %vm1407_vm2, %v2565_v39  ;;  %v2561_v29 = vsel %vm110_vm0, %v2553_v15, %v2560_v14 }
 0x4db   :  { %4829 = vmatmul.msk.f32.vlgmr.msrb.gmra.mxu3 %vm1407_vm2, %v2561_v29  ;;  %v671_v51 = vrot.slane %v664_v31, 4  ;;  %4997 = vpow2.f32 %v1522_v35  ;;  %v670_v24 = vsel %vm110_vm0, 0.0, %v669_v22 }
 0x4dd   :  { %v672_v38 = vsel %vm110_vm0, 0.0, %v671_v51 }
 0x4de   :  { %3510 = vxpose.xlu0.b32.start.end [1/1] (short) (narrow) %v660_v4, 8 }
 0x4e1   :  { %3478 = vxpose.xlu2.b32.start.end [1/1] (short) (narrow) %v668_v23, 8  ;;  %v4998_v16 = vpop.eup %4997 }
 0x4e2   :  { %v1533_v26 = vsel %vm1407_vm2, %v4998_v16, 0.0 }
 0x4e9   :  { %3574 = vxpose.xlu2.b32.start.end [1/1] (short) (narrow) %v664_v31, 8 }
 0x4f1   :  { %3606 = vxpose.xlu2.b32.start.end [1/1] (short) (narrow) %v672_v38, 8 }
 0x54f   :  { %1534 = vadd.xlane.f32.xlu0 %v1533_v26 }
 0x572   :  { %v3430_v32 = vpop.trf.xlu2 }
 0x573   :  { %v3652_v41 = vrot.slane %v3430_v32, 4 }
 0x578   :  { %3542 = vxpose.xlu0.b32.start.end [1/1] (short) (narrow) %v670_v24, 8  ;;  %v3462_v52 = vpop.trf.xlu1 }
 0x579   :  { %v3638_v40 = vrot.slane %v3462_v52, 4 }
 0x57a   :  { %v3398_v27 = vpop.trf.xlu0  ;;  %v3494_v25 = vpop.trf.xlu2 }
 0x57b   :  { %v3640_v42 = vrot.slane %v3398_v27, 4  ;;  %v3639_v37 = vsel %vm110_vm0, %v3638_v40, %v3398_v27  ;;  %v3650_v20 = vrot.slane %v3494_v25, 4 }
 0x57c   :  { %v3645_v19 = vperm.slane %v3639_v37, %v5256_v13 }
 0x57d   :  { %v3641_v43 = vsel %vm110_vm0, %v3462_v52, %v3640_v42  ;;  %v3651_v8 = vsel %vm110_vm0, %v3650_v20, %v3430_v32 }
 0x57e   :  { %v3688_v50 = vrot.slane %v3645_v19, 4  ;;  %v3657_v58 = vperm.slane %v3651_v8, %v5256_v13  ;;  %v3335_v8 = vpop.f32.mrf.mxu1 }
 0x580   :  { %v3689_v53 = vsel %vm110_vm0, %v3657_v58, %v3688_v50  ;;  %v3686_v0 = vrot.slane %v3657_v58, 4  ;;  %v2273_v50 = vpop.f32.mrf.mxu3 }
 0x581   :  { %v3697_v59 = vperm.slane %v3689_v53, %v5275_v36 }
 0x582   :  { %v3526_v63 = vpop.trf.xlu0  ;;  %v3590_v54 = vpop.trf.xlu2  ;;  %v3687_v31 = vsel %vm110_vm0, %v3686_v0, %v3645_v19 }
 0x583   :  { %v3662_v44 = vrot.slane %v3590_v54, 4  ;;  %v3664_v47 = vrot.slane %v3526_v63, 4  ;;  %v3740_v57 = vrot.slane %v3697_v59, 4  ;;  %v2299_v19 = vpop.f32.mrf.mxu0 }
 0x585   :  { %v3663_v6 = vsel %vm110_vm0, %v3662_v44, %v3526_v63  ;;  %v3665_v33 = vsel %vm110_vm0, %v3590_v54, %v3664_v47  ;;  %v2247_v47 = vpop.f32.mrf.mxu2 }
 0x586   :  { %v3669_v49 = vperm.slane %v3663_v6, %v5256_v13  ;;  %v3673_v5 = vperm.slane %v3665_v33, %v5256_v13 }
 0x588   :  { %v3712_v30 = vrot.slane %v3669_v49, 4  ;;  %v3289_v6 = vpop.f32.mrf.mxu3 }
 0x589   :  { %v3341_v58 = vsel %vm1407_vm2, %v3289_v6, -inf }
 0x58a   :  { %v3622_v11 = vpop.trf.xlu2 }
 0x58b   :  { %v3674_v15 = vrot.slane %v3622_v11, 4 }
 0x5c2   :  { %v1535_v10 = vpop.xlane.xlu0 %1534 }
 0x5c3   :  { %4999 = vrcp.f32 %v1535_v10 }
 0x5c9   :  { %v5000_v12 = vpop.eup %4999 }
 0x5ca   :  { %v1543_v34 = vmul.f32 %v5000_v12, %v4998_v16 }
 0x5cc   :  { %4826 = vmatpush.xpose.msk.msrb.mxu0 %vm1407_vm2, %v1543_v34  ;;  %v3693_v34 = vperm.slane %v3687_v31, %v5275_v36 }
 0x5ce   :  { %v3736_v54 = vrot.slane %v3693_v34, 4 }
 0x5cf   :  { %4827 = vmatmul.msk.f32.vlgmr.msrb.gmra.mxu0 %vm1407_vm2, %v5769_v46  ;;  %v3649_v46 = vperm.slane %v3641_v43, %v5256_v13 }
 0x5d0   :  { %3310 = vmatpush.msra.mxu0 %v5823_v1  ;;  %v3653_v1 = vsel %vm110_vm0, %v3494_v25, %v3652_v41 }
 0x5d1   :  { %v3661_v48 = vperm.slane %v3653_v1, %v5256_v13  ;;  %v3700_v56 = vrot.slane %v3649_v46, 4 }
 0x5d3   :  { %v3698_v7 = vrot.slane %v3661_v48, 4  ;;  %v3701_v45 = vsel %vm110_vm0, %v3661_v48, %v3700_v56  ;;  %v3347_v48 = vsel %vm1407_vm2, %v3335_v8, -inf }
 0x5d4   :  { %v3709_v39 = vperm.slane %v3701_v45, %v5275_v36 }
 0x5d5   :  { %v3699_v61 = vsel %vm110_vm0, %v3698_v7, %v3649_v46 }
 0x5d6   :  { %v3705_v55 = vperm.slane %v3699_v61, %v5275_v36  ;;  %v3748_v21 = vrot.slane %v3709_v39, 4 }
 0x5d7   :  { %4830 = vmatmul.msk.f32.vlgmr.msra.gmra.mxu0 %vm1407_vm2, %v2563_v3  ;;  %v3724_v3 = vrot.slane %v3673_v5, 4 }
 0x5d8   :  { %v3744_v12 = vrot.slane %v3705_v55, 4 }
 0x61c   :  { %v3558_v62 = vpop.trf.xlu0 }
 0x61d   :  { %v3675_v9 = vsel %vm110_vm0, %v3674_v15, %v3558_v62  ;;  %v3676_v17 = vrot.slane %v3558_v62, 4 }
 0x61e   :  { %v3681_v14 = vperm.slane %v3675_v9, %v5256_v13 }
 0x61f   :  { %v3677_v28 = vsel %vm110_vm0, %v3622_v11, %v3676_v17  ;;  %v3266_v11 = vpop.f32.mrf.mxu2 }
 0x620   :  { %v3685_v29 = vperm.slane %v3677_v28, %v5256_v13  ;;  %v3710_v4 = vrot.slane %v3681_v14, 4  ;;  %v3713_v18 = vsel %vm110_vm0, %v3681_v14, %v3712_v30  ;;  %v3338_v56 = vsel %vm1407_vm2, %v3266_v11, -inf }
 0x621   :  { %v3721_v23 = vperm.slane %v3713_v18, %v5275_v36 }
 0x622   :  { %v3722_v51 = vrot.slane %v3685_v29, 4  ;;  %v3725_v38 = vsel %vm110_vm0, %v3685_v29, %v3724_v3  ;;  %v3711_v35 = vsel %vm110_vm0, %v3710_v4, %v3669_v49 }
 0x623   :  { %v3741_v16 = vsel %vm110_vm0, %v3721_v23, %v3740_v57  ;;  %v3733_v26 = vperm.slane %v3725_v38, %v5275_v36  ;;  %v3717_v22 = vperm.slane %v3711_v35, %v5275_v36  ;;  %v3738_v24 = vrot.slane %v3721_v23, 4 }
 0x624   :  { %3846 = vxpose.xlu2.b32.start.end [1/1] (short) (narrow) %v3741_v16, 8  ;;  %v3723_v27 = vsel %vm110_vm0, %v3722_v51, %v3673_v5 }
 0x625   :  { %v3749_v63 = vsel %vm110_vm0, %v3733_v26, %v3748_v21  ;;  %v3729_v10 = vperm.slane %v3723_v27, %v5275_v36  ;;  %v3739_v32 = vsel %vm110_vm0, %v3738_v24, %v3697_v59  ;;  %v3734_v25 = vrot.slane %v3717_v22, 4 }
 0x626   :  { %3974 = vxpose.xlu0.b32.start.end [1/1] (short) (narrow) %v3749_v63, 8  ;;  %v3746_v41 = vrot.slane %v3733_v26, 4  ;;  %v3737_v43 = vsel %vm110_vm0, %v3717_v22, %v3736_v54 }
 0x627   :  { %v3745_v52 = vsel %vm110_vm0, %v3729_v10, %v3744_v12  ;;  %v3742_v40 = vrot.slane %v3729_v10, 4  ;;  %v5945_v42 = vsel %vm110_vm0, %v3734_v25, %v3693_v34 }
 0x628   :  { %3910 = vxpose.xlu1.b32.start.end [1/1] (short) (narrow) %v3745_v52, 8  ;;  %v3747_v20 = vsel %vm110_vm0, %v3746_v41, %v3709_v39 }
 0x629   :  { %v3743_v37 = vsel %vm110_vm0, %v3742_v40, %v3705_v55 }
 0x62c   :  { %3782 = vxpose.xlu2.b32.start.end [1/1] (short) (narrow) %v3737_v43, 8 }
 0x62e   :  { %3942 = vxpose.xlu0.b32.start.end [1/1] (short) (narrow) %v3747_v20, 8 }
 0x64c   :  { %v2325_v1 = vpop.f32.mrf.mxu0 }
 0x654   :  { %v3312_v46 = vpop.f32.mrf.mxu0 }
 0x655   :  { %v3344_v44 = vsel %vm1407_vm2, %v3312_v46, -inf }
 0x688   :  { %3345 = vmax.xlane.f32.xlu1 %v3344_v44 }
 0x69f   :  { %3348 = vmax.xlane.f32.xlu0 %v3347_v48 }
 0x6a7   :  { %3339 = vmax.xlane.f32.xlu0 %v3338_v56 }
 0x6af   :  { %3342 = vmax.xlane.f32.xlu0 %v3341_v58 }
 0x6bd   :  { %v3862_v51 = vpop.trf.xlu2 }
 0x6be   :  { %v4012_v38 = vrot.slane %v3862_v51, 4 }
 0x6c5   :  { %v3798_v21 = vpop.trf.xlu2 }
 0x6c6   :  { %v4013_v35 = vsel %vm110_vm0, %v4012_v38, %v3798_v21 }
 0x6ca   :  { %v3990_v33 = vpop.trf.xlu0 }
 0x6cb   :  { %v4024_v15 = vrot.slane %v3990_v33, 4 }
 0x6cc   :  { %v3926_v7 = vpop.trf.xlu1 }
 0x6cd   :  { %v4025_v49 = vsel %vm110_vm0, %v4024_v15, %v3926_v7 }
 0x6d2   :  { %v3958_v9 = vpop.trf.xlu0 }
 0x6d3   :  { %v4018_v54 = vrot.slane %v3958_v9, 4 }
 0x6d8   :  { %3814 = vxpose.xlu0.b32.start.end [1/1] (short) (narrow) %v3739_v32, 8 }
 0x6fb   :  { %v3346_v53 = vpop.xlane.xlu1 %3345 }
 0x6fc   :  { %v3352_v45 = vsub.f32 %v3312_v46, %v3346_v53 }
 0x6fe   :  { %v3358_v5 = vmul.f32 1.442695, %v3352_v45 }
 0x700   :  { %5001 = vpow2.f32 %v3358_v5 }
 0x706   :  { %v5002_v62 = vpop.eup %5001 }
 0x707   :  { %v3368_v0 = vsel %vm1407_vm2, %v5002_v62, 0.0 }
 0x708   :  { %3369 = vadd.xlane.f32.xlu1 %v3368_v0 }
 0x712   :  { %v3349_v17 = vpop.xlane.xlu0 %3348 }
 0x713   :  { %v3353_v3 = vsub.f32 %v3335_v8, %v3349_v17 }
 0x715   :  { %v3360_v29 = vmul.f32 1.442695, %v3353_v3 }
 0x71a   :  { %v3340_v59 = vpop.xlane.xlu0 %3339 }
 0x71b   :  { %v3350_v4 = vsub.f32 %v3266_v11, %v3340_v59 }
 0x71d   :  { %v3354_v18 = vmul.f32 1.442695, %v3350_v4 }
 0x722   :  { %v3343_v61 = vpop.xlane.xlu0 %3342 }
 0x723   :  { %v3351_v30 = vsub.f32 %v3289_v6, %v3343_v61 }
 0x725   :  { %v3356_v14 = vmul.f32 1.442695, %v3351_v30 }
 0x727   :  { %5003 = vpow2.f32 %v3356_v14 }
 0x728   :  { %5005 = vpow2.f32 %v3360_v29 }
 0x729   :  { %5007 = vpow2.f32 %v3354_v18 }
 0x72d   :  { %v5004_v39 = vpop.eup %5003 }
 0x72e   :  { %v3365_v28 = vsel %vm1407_vm2, %v5004_v39, 0.0  ;;  %v5006_v23 = vpop.eup %5005 }
 0x72f   :  { %3366 = vadd.xlane.f32.xlu2 %v3365_v28  ;;  %v3371_v57 = vsel %vm1407_vm2, %v5006_v23, 0.0  ;;  %v5008_v55 = vpop.eup %5007 }
 0x730   :  { %v3362_v31 = vsel %vm1407_vm2, %v5008_v55, 0.0 }
 0x742   :  { %2424 = vxpose.xlu1.b32.start.end [1/1] (short) (narrow) %v2325_v1, 8 }
 0x749   :  { %3372 = vadd.xlane.f32.xlu0 %v3371_v57 }
 0x751   :  { %3363 = vadd.xlane.f32.xlu0 %v3362_v31 }
 0x758   :  { %3878 = vxpose.xlu2.b32.start.end [1/1] (short) (narrow) %v3743_v37, 8 }
 0x760   :  { %2392 = vxpose.xlu2.b32.start.end [1/1] (short) (narrow) %v2299_v19, 8 }
 0x768   :  { %2360 = vxpose.xlu2.b32.start.end [1/1] (short) (narrow) %v2273_v50, 8  ;;  %v4017_v50 = vperm.slane %v4013_v35, %v5256_v13 }
 0x76a   :  { %v4030_v7 = vrot.slane %v4017_v50, 4 }
 0x77a   :  { %3750 = vxpose.xlu0.b32.start.end [1/1] (short) (narrow) %v5945_v42, 8  ;;  %v4029_v42 = vperm.slane %v4025_v49, %v5256_v13 }
 0x77b   :  { %v3370_v16 = vpop.xlane.xlu1 %3369 }
 0x77c   :  { %5009 = vrcp.f32 %v3370_v16  ;;  %v3830_v10 = vpop.trf.xlu0  ;;  %v4042_v43 = vrot.slane %v4029_v42, 4 }
 0x77d   :  { %v4006_v11 = vrot.slane %v3830_v10, 4 }
 0x782   :  { %v5010_v26 = vpop.eup %5009  ;;  %2328 = vxpose.xlu0.b32.start.end [1/1] (short) (narrow) %v2247_v47, 8 }
 0x783   :  { %v3380_v22 = vmul.f32 %v5010_v26, %v5002_v62 }
 0x785   :  { %4836 = vmatpush.xpose.msk.msrb.mxu0 %vm1407_vm2, %v3380_v22 }
 0x7a2   :  { %v3367_v24 = vpop.xlane.xlu2 %3366 }
 0x7a3   :  { %5011 = vrcp.f32 %v3367_v24 }
 0x7a9   :  { %v5012_v27 = vpop.eup %5011 }
 0x7aa   :  { %v3379_v63 = vmul.f32 %v5012_v27, %v5004_v39 }
 0x7ac   :  { %4834 = vmatpush.xpose.msk.msra.mxu3 %vm1407_vm2, %v3379_v63 }
 0x7bc   :  { %v3373_v12 = vpop.xlane.xlu0 %3372 }
 0x7bd   :  { %5013 = vrcp.f32 %v3373_v12 }
 0x7c3   :  { %v5014_v34 = vpop.eup %5013 }
 0x7c4   :  { %v3381_v32 = vmul.f32 %v5014_v34, %v5006_v23  ;;  %v3364_v25 = vpop.xlane.xlu0 %3363 }
 0x7c5   :  { %5015 = vrcp.f32 %v3364_v25 }
 0x7c6   :  { %4838 = vmatpush.xpose.msk.msrb.mxu1 %vm1407_vm2, %v3381_v32 }
 0x7cb   :  { %v5016_v52 = vpop.eup %5015 }
 0x7cc   :  { %v3378_v40 = vmul.f32 %v5016_v52, %v5008_v55 }
 0x7ce   :  { %4832 = vmatpush.xpose.msk.msra.mxu2 %vm1407_vm2, %v3378_v40 }
 0x7e6   :  { %v2440_v47 = vpop.trf.xlu1 }
 0x7e7   :  { %v2468_v48 = vrot.slane %v2440_v47, 4 }
 0x7f1   :  { %v3894_v41 = vpop.trf.xlu2 }
 0x7f2   :  { %v4019_v37 = vsel %vm110_vm0, %v4018_v54, %v3894_v41 }
 0x7f3   :  { %v4023_v20 = vperm.slane %v4019_v37, %v5256_v13 }
 0x7f5   :  { %v4043_v19 = vsel %vm110_vm0, %v4042_v43, %v4023_v20  ;;  %v4044_v1 = vrot.slane %v4023_v20, 4 }
 0x7f6   :  { %v4049_v58 = vperm.slane %v4043_v19, %v5275_v36 }
 0x7f7   :  { %v4045_v46 = vsel %vm110_vm0, %v4029_v42, %v4044_v1 }
 0x7f8   :  { %v4053_v53 = vperm.slane %v4045_v46, %v5275_v36  ;;  %v4054_v59 = vrot.slane %v4049_v58, 4 }
 0x7f9   :  { %v2408_v44 = vpop.trf.xlu2 }
 0x7fa   :  { %v2456_v17 = vrot.slane %v2408_v44, 4  ;;  %v4058_v3 = vrot.slane %v4053_v53, 4 }
 0x801   :  { %v2376_v8 = vpop.trf.xlu2 }
 0x802   :  { %v2470_v56 = vrot.slane %v2376_v8, 4  ;;  %v2469_v15 = vsel %vm110_vm0, %v2468_v48, %v2376_v8 }
 0x803   :  { %v2475_v0 = vperm.slane %v2469_v15, %v5256_v13 }
 0x804   :  { %v2471_v45 = vsel %vm110_vm0, %v2440_v47, %v2470_v56 }
 0x805   :  { %v2479_v30 = vperm.slane %v2471_v45, %v5256_v13  ;;  %v2480_v4 = vrot.slane %v2475_v0, 4 }
 0x807   :  { %v2492_v51 = vrot.slane %v2479_v30, 4 }
 0x81e   :  { %v3766_v6 = vpop.trf.xlu0 }
 0x81f   :  { %v4007_v33 = vsel %vm110_vm0, %v4006_v11, %v3766_v6 }
 0x820   :  { %v4011_v49 = vperm.slane %v4007_v33, %v5256_v13 }
 0x822   :  { %v4031_v5 = vsel %vm110_vm0, %v4030_v7, %v4011_v49  ;;  %v4032_v62 = vrot.slane %v4011_v49, 4 }
 0x823   :  { %v4037_v9 = vperm.slane %v4031_v5, %v5275_v36 }
 0x824   :  { %v4033_v61 = vsel %vm110_vm0, %v4017_v50, %v4032_v62 }
 0x825   :  { %v4055_v14 = vsel %vm110_vm0, %v4054_v59, %v4037_v9  ;;  %v4056_v39 = vrot.slane %v4037_v9, 4  ;;  %v4041_v28 = vperm.slane %v4033_v61, %v5275_v36 }
 0x826   :  { %4833 = vmatmul.msk.f32.vlgmr.msra.gmra.mxu2 %vm1407_vm2, %v4055_v14  ;;  %v2344_v29 = vpop.trf.xlu0 }
 0x827   :  { %v2457_v18 = vsel %vm110_vm0, %v2456_v17, %v2344_v29  ;;  %v2458_v23 = vrot.slane %v2344_v29, 4  ;;  %v4057_v57 = vsel %vm110_vm0, %v4049_v58, %v4056_v39  ;;  %v4059_v55 = vsel %vm110_vm0, %v4058_v3, %v4041_v28 }
 0x828   :  { %v2463_v31 = vperm.slane %v2457_v18, %v5256_v13  ;;  %4835 = vmatmul.msk.f32.vlgmr.msra.gmra.mxu3 %vm1407_vm2, %v4057_v57  ;;  %4837 = vmatmul.msk.f32.vlgmr.msrb.gmra.mxu0 %vm1407_vm2, %v4059_v55  ;;  %v4060_v38 = vrot.slane %v4041_v28, 4 }
 0x829   :  { %v2459_v21 = vsel %vm110_vm0, %v2408_v44, %v2458_v23 }
 0x82a   :  { %v2467_v35 = vperm.slane %v2459_v21, %v5256_v13  ;;  %v2482_v16 = vrot.slane %v2463_v31, 4  ;;  %v2481_v26 = vsel %vm110_vm0, %v2480_v4, %v2463_v31  ;;  %v4061_v22 = vsel %vm110_vm0, %v4053_v53, %v4060_v38 }
 0x82b   :  { %v2487_v24 = vperm.slane %v2481_v26, %v5275_v36  ;;  %4839 = vmatmul.msk.f32.vlgmr.msrb.gmra.mxu1 %vm1407_vm2, %v4061_v22 }
 0x82c   :  { %v2494_v27 = vrot.slane %v2467_v35, 4  ;;  %v2483_v63 = vsel %vm110_vm0, %v2475_v0, %v2482_v16  ;;  %v2493_v10 = vsel %vm110_vm0, %v2492_v51, %v2467_v35 }
 0x82d   :  { %v2491_v12 = vperm.slane %v2483_v63, %v5275_v36  ;;  %v2499_v34 = vperm.slane %v2493_v10, %v5275_v36  ;;  %v2504_v32 = vrot.slane %v2487_v24, 4 }
 0x82e   :  { %v2495_v25 = vsel %vm110_vm0, %v2479_v30, %v2494_v27 }
 0x82f   :  { %v2503_v52 = vperm.slane %v2495_v25, %v5275_v36  ;;  %v2506_v40 = vrot.slane %v2491_v12, 4  ;;  %v2508_v42 = vrot.slane %v2499_v34, 4  ;;  %v2505_v54 = vsel %vm110_vm0, 0.0, %v2504_v32 }
 0x831   :  { %v2507_v41 = vsel %vm110_vm0, 0.0, %v2506_v40  ;;  %v2510_v37 = vrot.slane %v2503_v52, 4  ;;  %v4350_v43 = vsel %vm110_vm0, %v2506_v40, %v2487_v24  ;;  %v2509_v1 = vsel %vm110_vm0, 0.0, %v2508_v42 }
 0x832   :  { %v4355_v20 = vrot.slane %v2507_v41, 4  ;;  %v4354_v8 = vperm.slane %v4350_v43, %v5256_v13 }
 0x833   :  { %v2511_v19 = vsel %vm110_vm0, 0.0, %v2510_v37  ;;  %v4361_v47 = vsel %vm110_vm0, %v2510_v37, %v2499_v34 }
 0x834   :  { %v4366_v46 = vrot.slane %v2511_v19, 4  ;;  %v4356_v44 = vsel %vm110_vm0, %v4355_v20, %v2505_v54  ;;  %v4365_v11 = vperm.slane %v4361_v47, %v5256_v13  ;;  %v4374_v62 = vrot.slane %v4354_v8, 4 }
 0x835   :  { %v4360_v48 = vperm.slane %v4356_v44, %v5256_v13  ;;  %v4492_v44 = vld [vmem:[%s6197_s6 + $0x10] sm:$0xff] }
 0x836   :  { %v4367_v50 = vsel %vm110_vm0, %v4366_v46, %v2509_v1  ;;  %v4386_v5 = vrot.slane %v4365_v11, 4  ;;  %v4493_v46 = vld [vmem:[%s6197_s6 + $0x18] sm:$0xff] }
 0x837   :  { %v4371_v56 = vperm.slane %v4367_v50, %v5256_v13  ;;  %v4372_v6 = vrot.slane %v4360_v48, 4  ;;  %v4375_v0 = vsel %vm110_vm0, %v4360_v48, %v4374_v62  ;;  %4516 = vmatpush.msrb.mxu2 %v4493_v46 }
 0x838   :  { %v4383_v17 = vperm.slane %v4375_v0, %v5275_v36 }
 0x839   :  { %v4373_v58 = vsel %vm110_vm0, %v4372_v6, %v4354_v8  ;;  %v4384_v33 = vrot.slane %v4371_v56, 4  ;;  %v4387_v59 = vsel %vm110_vm0, %v4371_v56, %v4386_v5  ;;  %4517 = vmatpush.msrb.mxu2 %v4492_v44  ;;  %v5144_v44 = vmov 32.0  }
 0x83a   :  { %v4379_v15 = vperm.slane %v4373_v58, %v5275_v36  ;;  %v4395_v61 = vperm.slane %v4387_v59, %v5275_v36  ;;  %v4402_v30 = vrot.slane %v4383_v17, 4  ;;  %5017 = vrcp.f32 %v5144_v44 }
 0x83b   :  { %v4385_v7 = vsel %vm110_vm0, %v4384_v33, %v4365_v11  ;;  %v4491_v11 = vld [vmem:[%s6197_s6 + $0x8] sm:$0xff] }
 0x83c   :  { %v4391_v49 = vperm.slane %v4385_v7, %v5275_v36  ;;  %v4398_v53 = vrot.slane %v4379_v15, 4  ;;  %v4400_v39 = vrot.slane %v4395_v61, 4  ;;  %v4403_v28 = vsel %vm110_vm0, %v4395_v61, %v4402_v30  ;;  %4518 = vmatpush.msrb.mxu2 %v4491_v11 }
 0x83e   :  { %v4399_v45 = vsel %vm110_vm0, %v4391_v49, %v4398_v53  ;;  %v4396_v9 = vrot.slane %v4391_v49, 4  ;;  %v4401_v3 = vsel %vm110_vm0, %v4400_v39, %v4383_v17 }
 0x83f   :  { %4460 = vrot.lane.b32.xlu1 %v4399_v45, %s5135_s26 }
 0x840   :  { %v4397_v14 = vsel %vm110_vm0, %v4396_v9, %v4379_v15 }
 0x8a5   :  { %v4137_v55 = vpop.f32.mrf.mxu0 }
 0x8a8   :  { %v4163_v29 = vpop.f32.mrf.mxu1 }
 0x8a9   :  { %4262 = vxpose.xlu2.b32.start.end [1/1] (short) (narrow) %v4163_v29, 8  ;;  %v4085_v4 = vpop.f32.mrf.mxu2 }
 0x8aa   :  { %4166 = vxpose.xlu1.b32.start.end [1/1] (short) (narrow) %v4085_v4, 8 }
 0x8ab   :  { %v4111_v18 = vpop.f32.mrf.mxu3 }
 0x8ac   :  { %4198 = vxpose.xlu0.b32.start.end [1/1] (short) (narrow) %v4111_v18, 8 }
 0x8b1   :  { %v4461_v23 = vpop.permute.xlu1 %4460 }
 0x8b2   :  { %v6029_v57 = vsel %vm1407_vm2, %v4397_v14, %v4461_v23 }
 0x8b4   :  { %4230 = vxpose.xlu0.b32.start.end [1/1] (short) (narrow) %v4137_v55, 8 }
 0x912   :  { %4468 = vrot.lane.b32.xlu2 %v4401_v3, %s5142_s5 }
 0x922   :  { %4476 = vrot.lane.b32.xlu0 %v4403_v28, %s5143_s18 }
 0x942   :  { %v4278_v31 = vpop.trf.xlu2 }
 0x943   :  { %v4306_v38 = vrot.slane %v4278_v31, 4 }
 0x94e   :  { %v4182_v35 = vpop.trf.xlu1 }
 0x94f   :  { %v4296_v22 = vrot.slane %v4182_v35, 4 }
 0x950   :  { %v4214_v51 = vpop.trf.xlu0 }
 0x951   :  { %v4308_v21 = vrot.slane %v4214_v51, 4  ;;  %v4307_v26 = vsel %vm110_vm0, %v4306_v38, %v4214_v51 }
 0x952   :  { %v4313_v27 = vperm.slane %v4307_v26, %v5256_v13 }
 0x953   :  { %v4309_v16 = vsel %vm110_vm0, %v4278_v31, %v4308_v21 }
 0x954   :  { %v4317_v24 = vperm.slane %v4309_v16, %v5256_v13  ;;  %v4318_v52 = vrot.slane %v4313_v27, 4 }
 0x956   :  { %v4330_v34 = vrot.slane %v4317_v24, 4 }
 0x958   :  { %v4246_v63 = vpop.trf.xlu0 }
 0x959   :  { %v4294_v10 = vrot.slane %v4246_v63, 4  ;;  %v4297_v12 = vsel %vm110_vm0, %v4246_v63, %v4296_v22  ;;  %v4490_v22 = vld [vmem:[%s6197_s6] sm:$0xff] }
 0x95a   :  { %v4305_v32 = vperm.slane %v4297_v12, %v5256_v13  ;;  %4519 = vmatpush.msrb.mxu2 %v4490_v22 }
 0x95b   :  { %v4295_v25 = vsel %vm110_vm0, %v4294_v10, %v4182_v35 }
 0x95c   :  { %v4301_v40 = vperm.slane %v4295_v25, %v5256_v13  ;;  %v4331_v42 = vsel %vm110_vm0, %v4330_v34, %v4305_v32  ;;  %v4332_v54 = vrot.slane %v4305_v32, 4 }
 0x95d   :  { %v4337_v41 = vperm.slane %v4331_v42, %v5275_v36 }
 0x95e   :  { %v4319_v37 = vsel %vm110_vm0, %v4318_v52, %v4301_v40  ;;  %v4320_v43 = vrot.slane %v4301_v40, 4  ;;  %v4333_v20 = vsel %vm110_vm0, %v4317_v24, %v4332_v54 }
 0x95f   :  { %v4325_v19 = vperm.slane %v4319_v37, %v5275_v36  ;;  %v4341_v1 = vperm.slane %v4333_v20, %v5275_v36  ;;  %v4346_v48 = vrot.slane %v4337_v41, 4  ;;  %v4978_v37 = vld [vmem:[%s6198_s7] ss:$0 sm:$0xff] }
 0x960   :  { %v4321_v47 = vsel %vm110_vm0, %v4313_v27, %v4320_v43 }
 0x961   :  { %v4329_v8 = vperm.slane %v4321_v47, %v5275_v36  ;;  %v4348_v50 = vrot.slane %v4341_v1, 4  ;;  %v4342_v56 = vrot.slane %v4325_v19, 4  ;;  %v4347_v53 = vsel %vm110_vm0, 0.0, %v4346_v48  ;;  %v5018_v48 = vpop.eup %5017 }
 0x962   :  { %vm4542_vm5 = vweird.f32 %v5018_v48 }
 0x963   :  { %v4344_v6 = vrot.slane %v4329_v8, 4  ;;  %v4349_v58 = vsel %vm110_vm0, 0.0, %v4348_v50  ;;  %v4415_v33 = vsel %vm110_vm0, %v4348_v50, %v4337_v41  ;;  %v4343_v17 = vsel %vm110_vm0, 0.0, %v4342_v56 }
 0x964   :  { %v4419_v15 = vperm.slane %v4415_v33, %v5256_v13  ;;  %v4420_v7 = vrot.slane %v4349_v58, 4  ;;  %v4538_v50 = vmul.f32 32.0, %v5018_v48 }
 0x965   :  { %v4345_v49 = vsel %vm110_vm0, 0.0, %v4344_v6  ;;  %v4404_v45 = vsel %vm110_vm0, %v4344_v6, %v4325_v19 }
 0x966   :  { %v4421_v5 = vsel %vm110_vm0, %v4420_v7, %v4347_v53  ;;  %v4408_v62 = vperm.slane %v4404_v45, %v5256_v13  ;;  %v4409_v0 = vrot.slane %v4345_v49, 4  ;;  %v4440_v9 = vrot.slane %v4419_v15, 4 }
 0x967   :  { %v4425_v59 = vperm.slane %v4421_v5, %v5256_v13  ;;  %v4539_v11 = vsub.f32 1.0, %v4538_v50  ;;  %v4982_v50 = vld [vmem:[%s6204_s13] ss:$0 sm:$0xff] }
 0x968   :  { %v4410_v61 = vsel %vm110_vm0, %v4409_v0, %v4343_v17  ;;  %v4428_v30 = vrot.slane %v4408_v62, 4  ;;  %v4595_v0 = vld [vmem:[#allocation7 + $0x18] sm:$0xff]  ;;  %v4593_v17 = vld [vmem:[#allocation7 + $0x8] sm:$0xff] }
 0x969   :  { %v4414_v14 = vperm.slane %v4410_v61, %v5256_v13  ;;  %v4441_v39 = vsel %vm110_vm0, %v4425_v59, %v4440_v9  ;;  %v4438_v28 = vrot.slane %v4425_v59, 4  ;;  %v4540_v56 = vmul.f32 %v5018_v48, %v4539_v11  ;;  %v4594_v9 = vld [vmem:[#allocation7 + $0x10] sm:$0xff]  ;;  %4618 = vmatpush.msrb.mxu3 %v4595_v0  ;;  %v4592_v59 = vld [vmem:[#allocation7] sm:$0xff] }
 0x96a   :  { %v4449_v3 = vperm.slane %v4441_v39, %v5275_v36 }
 0x96b   :  { %v4429_v29 = vsel %vm110_vm0, %v4414_v14, %v4428_v30  ;;  %v4426_v4 = vrot.slane %v4414_v14, 4  ;;  %v4439_v18 = vsel %vm110_vm0, %v4438_v28, %v4419_v15  ;;  %v4541_v6 = vadd.f32 %v5018_v48, %v4540_v56  ;;  %4619 = vmatpush.msrb.mxu3 %v4594_v9 }
 0x96c   :  { %v4437_v23 = vperm.slane %v4429_v29, %v5275_v36  ;;  %v4454_v55 = vrot.slane %v4449_v3, 4  ;;  %v4445_v31 = vperm.slane %v4439_v18, %v5275_v36  ;;  %v4469_v10 = vpop.permute.xlu2 %4468 }
 0x96d   :  { %v4427_v51 = vsel %vm110_vm0, %v4426_v4, %v4408_v62  ;;  %v4485_v12 = vsel %vm4484_vm3, %v6029_v57, %v4469_v10  ;;  %v6099_v58 = vsel %vm4542_vm5, %v5018_v48, %v4541_v6  ;;  %4620 = vmatpush.msrb.mxu3 %v4593_v17  ;;  %v4634_v10 = vld [vmem:[%s6203_s12 + $0x18] sm:$0xff] }
 0x96e   :  { %v4455_v38 = vsel %vm110_vm0, %v4454_v55, %v4437_v23  ;;  %v4433_v21 = vperm.slane %v4427_v51, %v5275_v36  ;;  %v4450_v35 = vrot.slane %v4445_v31, 4  ;;  %v4456_v27 = vrot.slane %v4437_v23, 4  ;;  %v4979_v23 = vld [vmem:[%s6199_s8] ss:$0 sm:$0xff] }
 0x96f   :  { %4470 = vrot.lane.b32.xlu1 %v4455_v38, %s5142_s5  ;;  %4621 = vmatpush.msrb.mxu3 %v4592_v59  ;;  %v4980_v51 = vld [vmem:[%s6200_s9] ss:$0 sm:$0xff] }
 0x970   :  { %v4451_v16 = vsel %vm110_vm0, %v4450_v35, %v4433_v21  ;;  %v4452_v26 = vrot.slane %v4433_v21, 4  ;;  %v4457_v63 = vsel %vm110_vm0, %v4449_v3, %v4456_v27  ;;  %v4638_v35 = vld [vmem:[%s6203_s12 + $0x38] sm:$0xff]  ;;  %v4635_v27 = vld [vmem:[%s6203_s12 + $0x20] sm:$0xff] }
 0x971   :  { %4658 = vmatpush.msra.mxu0 %v4638_v35 }
 0x972   :  { %v4453_v24 = vsel %vm110_vm0, %v4445_v31, %v4452_v26  ;;  %v4636_v26 = vld [vmem:[%s6203_s12 + $0x28] sm:$0xff] }
 0x977   :  { %4462 = vrot.lane.b32.xlu1 %v4453_v24, %s5135_s26 }
 0x97f   :  { %4478 = vrot.lane.b32.xlu1 %v4457_v63, %s5143_s18 }
 0x994   :  { %v4477_v34 = vpop.permute.xlu0 %4476 }
 0x995   :  { %v4488_v32 = vsel %vm4487_vm4, %v4485_v12, %v4477_v34 }
 0x996   :  { %4840 = vmatmul.msk.f32.vlgmr.msrb.gmra.mxu2 %vm206_vm1, %v4488_v32 }
 0x9e1   :  { %v4471_v25 = vpop.permute.xlu1 %4470 }
 0x9e9   :  { %v4463_v52 = vpop.permute.xlu1 %4462 }
 0x9ea   :  { %v4483_v40 = vsel %vm1407_vm2, %v4451_v16, %v4463_v52  ;;  %v4637_v16 = vld [vmem:[%s6203_s12 + $0x30] sm:$0xff] }
 0x9eb   :  { %v4486_v54 = vsel %vm4484_vm3, %v4483_v40, %v4471_v25  ;;  %4659 = vmatpush.msra.mxu0 %v4637_v16 }
 0x9ed   :  { %4660 = vmatpush.msra.mxu0 %v4636_v26 }
 0x9ef   :  { %4661 = vmatpush.msra.mxu0 %v4635_v27 }
 0x9f1   :  { %v4479_v42 = vpop.permute.xlu1 %4478  ;;  %4662 = vmatpush.msra.mxu0 %v4634_v10 }
 0x9f2   :  { %v4489_v41 = vsel %vm4487_vm4, %v4486_v54, %v4479_v42  ;;  %vm4783_vm4 = vcmask 254976  }
 0x9f3   :  { %4841 = vmatmul.msk.f32.gmra.mxu2 %vm206_vm1, %v4489_v41 }
 0xa19   :  { %v4521_v43 = vpop.f32.mrf.mxu2 }
 0xa1a   :  { %v4522_v20 = vadd.f32 %v4978_v37, %v4521_v43  ;;  %v4633_v43 = vld [vmem:[%s6203_s12 + $0x10] sm:$0xff] }
 0xa1b   :  { %4663 = vmatpush.msra.mxu0 %v4633_v43 }
 0xa1c   :  { %v4527_v57 = vadd.f32 %v4522_v20, %v5294_v60  ;;  %v4632_v20 = vld [vmem:[%s6203_s12 + $0x8] sm:$0xff] }
 0xa1d   :  { %4664 = vmatpush.msra.mxu0 %v4632_v20 }
 0xa1e   :  { %v4531_v19 = vsel %vm206_vm1, %v4527_v57, 0.0 }
 0xa1f   :  { %4532 = vadd.xlane.f32.xlu2 %v4531_v19  ;;  %v4981_v19 = vld [vmem:[%s6202_s11] ss:$0 sm:$0xff] }
 0xa76   :  { %v4524_v1 = vpop.f32.mrf.mxu2 }
 0xa77   :  { %v4525_v46 = vadd.f32 %v4978_v37, %v4524_v1 }
 0xa79   :  { %v4528_v47 = vadd.f32 %v4525_v46, %v5302_v2 }
 0xa7b   :  { %v4534_v8 = vsel %vm206_vm1, %v4528_v47, 0.0 }
 0xa7c   :  { %4535 = vadd.xlane.f32.xlu1 %v4534_v8 }
 0xa92   :  { %v4533_v60 = vpop.xlane.xlu2 %4532 }
 0xa93   :  { %v4544_v33 = vmul.f32 %v6099_v58, %v4533_v60 }
 0xa95   :  { %v4546_v15 = vsub.f32 %v4527_v57, %v4544_v33  ;;  %v4631_v57 = vld [vmem:[%s6203_s12] sm:$0xff] }
 0xa96   :  { %4665 = vmatpush.msra.mxu0 %v4631_v57 }
 0xa97   :  { %v4548_v7 = vmul.f32 %v4546_v15, %v4546_v15 }
 0xa99   :  { %v4550_v49 = vsel %vm206_vm1, %v4548_v7, 0.0 }
 0xa9a   :  { %4551 = vadd.xlane.f32.xlu0 %v4550_v49 }
 0xaef   :  { %v4536_v2 = vpop.xlane.xlu1 %4535 }
 0xaf0   :  { %v4545_v53 = vmul.f32 %v6099_v58, %v4536_v2 }
 0xaf2   :  { %v4547_v45 = vsub.f32 %v4528_v47, %v4545_v53 }
 0xaf4   :  { %v4549_v5 = vmul.f32 %v4547_v45, %v4547_v45 }
 0xaf6   :  { %v4553_v62 = vsel %vm206_vm1, %v4549_v5, 0.0 }
 0xaf7   :  { %4554 = vadd.xlane.f32.xlu2 %v4553_v62 }
 0xb0d   :  { %v4552_v61 = vpop.xlane.xlu0 %4551 }
 0xb0e   :  { %v4556_v30 = vmul.f32 %v4552_v61, %v6099_v58 }
 0xb10   :  { %v4558_v14 = vadd.f32 1e-05, %v4556_v30 }
 0xb12   :  { %5019 = vrsqrt.f32 %v4558_v14  ;;  %vm4566_vm7 = vweird.f32 %v4558_v14 }
 0xb18   :  { %v5020_v39 = vpop.eup %5019 }
 0xb19   :  { %v4561_v28 = vmul.f32 %v5020_v39, %v4558_v14  ;;  %vm4567_vm6 = vweird.f32 %v5020_v39 }
 0xb1a   :  { %vm4568_vm8 = vmor %vm4566_vm7, %vm4567_vm6 }
 0xb1b   :  { %v4562_v3 = vmul.f32 %v5020_v39, %v4561_v28 }
 0xb1d   :  { %v4563_v29 = vmul.f32 0.5, %v4562_v3 }
 0xb1f   :  { %v4564_v4 = vsub.f32 1.5, %v4563_v29 }
 0xb21   :  { %v4565_v18 = vmul.f32 %v5020_v39, %v4564_v4 }
 0xb23   :  { %v4569_v55 = vsel %vm4568_vm8, %v5020_v39, %v4565_v18 }
 0xb24   :  { %v4580_v31 = vmul.f32 %v4569_v55, %v4546_v15 }
 0xb26   :  { %v4585_v38 = vmul.f32 %v4979_v23, %v4580_v31 }
 0xb28   :  { %v4590_v21 = vadd.f32 %v4980_v51, %v4585_v38 }
 0xb2a   :  { %4842 = vmatmul.msk.f32.vlgmr.msrb.gmra.mxu3 %vm206_vm1, %v4590_v21 }
 0xb6a   :  { %v4555_v22 = vpop.xlane.xlu2 %4554 }
 0xb6b   :  { %v4557_v24 = vmul.f32 %v4555_v22, %v6099_v58  ;;  %v4984_v22 = vld [vmem:[%s6206_s15] ss:$0 sm:$0xff] }
 0xb6d   :  { %v4559_v63 = vadd.f32 1e-05, %v4557_v24 }
 0xb6f   :  { %5021 = vrsqrt.f32 %v4559_v63  ;;  %vm4576_vm10 = vweird.f32 %v4559_v63 }
 0xb75   :  { %v5022_v12 = vpop.eup %5021 }
 0xb76   :  { %v4571_v34 = vmul.f32 %v5022_v12, %v4559_v63  ;;  %vm4577_vm9 = vweird.f32 %v5022_v12 }
 0xb77   :  { %vm4578_vm11 = vmor %vm4576_vm10, %vm4577_vm9 }
 0xb78   :  { %v4572_v32 = vmul.f32 %v5022_v12, %v4571_v34 }
 0xb7a   :  { %v4573_v25 = vmul.f32 0.5, %v4572_v32 }
 0xb7c   :  { %v4574_v52 = vsub.f32 1.5, %v4573_v25 }
 0xb7e   :  { %v4575_v40 = vmul.f32 %v5022_v12, %v4574_v52 }
 0xb80   :  { %v4579_v42 = vsel %vm4578_vm11, %v5022_v12, %v4575_v40 }
 0xb81   :  { %v4581_v54 = vmul.f32 %v4579_v42, %v4547_v45 }
 0xb83   :  { %v4586_v41 = vmul.f32 %v4979_v23, %v4581_v54 }
 0xb85   :  { %v4591_v37 = vadd.f32 %v4980_v51, %v4586_v41 }
 0xb87   :  { %4843 = vmatmul.msk.f32.gmra.mxu3 %vm206_vm1, %v4591_v37 }
 0xbad   :  { %v4623_v1 = vpop.f32.mrf.mxu3 }
 0xbae   :  { %v4624_v46 = vadd.f32 %v4981_v19, %v4623_v1 }
 0xbb0   :  { %v4629_v44 = vmax.f32 %v4624_v46, 0.0 }
 0xbb2   :  { %4844 = vmatmul.msk.f32.vlgmr.msra.gmra.mxu0 %vm4643_vm12, %v4629_v44 }
 0xc0a   :  { %v4626_v47 = vpop.f32.mrf.mxu3 }
 0xc0b   :  { %v4627_v8 = vadd.f32 %v4981_v19, %v4626_v47 }
 0xc0d   :  { %v4630_v48 = vmax.f32 %v4627_v8, 0.0 }
 0xc0f   :  { %4845 = vmatmul.msk.f32.gmra.mxu0 %vm4643_vm12, %v4630_v48 }
 0xc2f   :  { %v4667_v11 = vpop.f32.mrf.mxu0 }
 0xc30   :  { %v4668_v56 = vadd.f32 %v4982_v50, %v4667_v11 }
 0xc32   :  { %v4673_v6 = vadd.f32 %v4668_v56, %v4590_v21  ;;  %v4983_v21 = vld [vmem:[%s6205_s14] ss:$0 sm:$0xff]  ;;  %s5145_s14 = smov [#allocation8]  }
 0xc33   :  { %s4796_s15 = sshll.u32 %s5145_s14, 4  ;;  %s4797_s15 = int_to_ptr.vmem [resolvable:$true] %s4796_s15 }
 0xc34   :  { %v4677_v60 = vsel %vm206_vm1, %v4673_v6, 0.0 }
 0xc35   :  { %4678 = vadd.xlane.f32.xlu1 %v4677_v60 }
 0xc8c   :  { %v4670_v33 = vpop.f32.mrf.mxu0 }
 0xc8d   :  { %v4671_v15 = vadd.f32 %v4982_v50, %v4670_v33 }
 0xc8f   :  { %v4674_v7 = vadd.f32 %v4671_v15, %v4591_v37 }
 0xc91   :  { %v4680_v49 = vsel %vm206_vm1, %v4674_v7, 0.0 }
 0xc92   :  { %4681 = vadd.xlane.f32.xlu2 %v4680_v49 }
 0xca8   :  { %v4679_v2 = vpop.xlane.xlu1 %4678 }
 0xca9   :  { %v4683_v53 = vmul.f32 %v4679_v2, %v6099_v58 }
 0xcab   :  { %v4685_v45 = vsub.f32 %v4673_v6, %v4683_v53 }
 0xcad   :  { %v4687_v5 = vmul.f32 %v4685_v45, %v4685_v45 }
 0xcaf   :  { %v4689_v62 = vsel %vm206_vm1, %v4687_v5, 0.0 }
 0xcb0   :  { %4690 = vadd.xlane.f32.xlu0 %v4689_v62 }
 0xd05   :  { %v4682_v0 = vpop.xlane.xlu2 %4681 }
 0xd06   :  { %v4684_v9 = vmul.f32 %v4682_v0, %v6099_v58 }
 0xd08   :  { %v4686_v17 = vsub.f32 %v4674_v7, %v4684_v9 }
 0xd0a   :  { %v4688_v59 = vmul.f32 %v4686_v17, %v4686_v17 }
 0xd0c   :  { %v4692_v61 = vsel %vm206_vm1, %v4688_v59, 0.0 }
 0xd0d   :  { %4693 = vadd.xlane.f32.xlu1 %v4692_v61 }
 0xd23   :  { %v4691_v30 = vpop.xlane.xlu0 %4690 }
 0xd24   :  { %v4695_v14 = vmul.f32 %v4691_v30, %v6099_v58 }
 0xd26   :  { %v4697_v39 = vadd.f32 1e-05, %v4695_v14 }
 0xd28   :  { %5023 = vrsqrt.f32 %v4697_v39  ;;  %vm4705_vm14 = vweird.f32 %v4697_v39 }
 0xd2e   :  { %v5024_v28 = vpop.eup %5023 }
 0xd2f   :  { %v4700_v3 = vmul.f32 %v5024_v28, %v4697_v39  ;;  %vm4706_vm13 = vweird.f32 %v5024_v28 }
 0xd30   :  { %vm4707_vm15 = vmor %vm4705_vm14, %vm4706_vm13 }
 0xd31   :  { %v4701_v29 = vmul.f32 %v5024_v28, %v4700_v3 }
 0xd33   :  { %v4702_v4 = vmul.f32 0.5, %v4701_v29 }
 0xd35   :  { %v4703_v18 = vsub.f32 1.5, %v4702_v4 }
 0xd37   :  { %v4704_v31 = vmul.f32 %v5024_v28, %v4703_v18 }
 0xd39   :  { %v4708_v38 = vsel %vm4707_vm15, %v5024_v28, %v4704_v31 }
 0xd3a   :  { %v4719_v35 = vmul.f32 %v4708_v38, %v4685_v45 }
 0xd3c   :  { %v4724_v24 = vmul.f32 %v4983_v21, %v4719_v35 }
 0xd3e   :  { %v4729_v63 = vadd.f32 %v4984_v22, %v4724_v24 }
 0xd40   :  { %v4731_v34 = vrot.slane %v4729_v63, 4  ;;  %v4736_v40 = vperm.slane %v4729_v63, %v5256_v13 }
 0xd42   :  { %v4732_v52 = vsel %vm110_vm0, 0.0, %v4731_v34  ;;  %v4753_v37 = vrot.slane %v4736_v40, 4 }
 0xd43   :  { %v4740_v41 = vperm.slane %v4732_v52, %v5256_v13 }
 0xd45   :  { %v4765_v46 = vrot.slane %v4740_v41, 4 }
 0xd80   :  { %v4694_v23 = vpop.xlane.xlu1 %4693 }
 0xd81   :  { %v4696_v55 = vmul.f32 %v4694_v23, %v6099_v58 }
 0xd83   :  { %v4698_v51 = vadd.f32 1e-05, %v4696_v55 }
 0xd85   :  { %5025 = vrsqrt.f32 %v4698_v51  ;;  %vm4715_vm2 = vweird.f32 %v4698_v51 }
 0xd8b   :  { %v5026_v16 = vpop.eup %5025 }
 0xd8c   :  { %v4710_v26 = vmul.f32 %v5026_v16, %v4698_v51  ;;  %vm4716_vm1 = vweird.f32 %v5026_v16 }
 0xd8d   :  { %vm4717_vm3 = vmor %vm4715_vm2, %vm4716_vm1 }
 0xd8e   :  { %v4711_v58 = vmul.f32 %v5026_v16, %v4710_v26 }
 0xd90   :  { %v4712_v27 = vmul.f32 0.5, %v4711_v58 }
 0xd92   :  { %v4713_v10 = vsub.f32 1.5, %v4712_v27 }
 0xd94   :  { %v4714_v12 = vmul.f32 %v5026_v16, %v4713_v10 }
 0xd96   :  { %v4718_v32 = vsel %vm4717_vm3, %v5026_v16, %v4714_v12 }
 0xd97   :  { %v4720_v25 = vmul.f32 %v4718_v32, %v4686_v17 }
 0xd99   :  { %v4725_v42 = vmul.f32 %v4983_v21, %v4720_v25 }
 0xd9b   :  { %v4730_v54 = vadd.f32 %v4984_v22, %v4725_v42 }
 0xd9d   :  { %v4741_v43 = vrot.slane %v4730_v54, 4  ;;  %v4746_v20 = vperm.slane %v4730_v54, %v5256_v13 }
 0xd9f   :  { %v4742_v57 = vsel %vm110_vm0, 0.0, %v4741_v43  ;;  %v4751_v19 = vrot.slane %v4746_v20, 4  ;;  %v4754_v1 = vsel %vm110_vm0, %v4746_v20, %v4753_v37 }
 0xda0   :  { %v4750_v44 = vperm.slane %v4742_v57, %v5256_v13  ;;  %v4762_v47 = vperm.slane %v4754_v1, %v5275_v36 }
 0xda1   :  { %v4752_v8 = vsel %vm110_vm0, %v4751_v19, %v4736_v40 }
 0xda2   :  { %v4758_v48 = vperm.slane %v4752_v8, %v5275_v36  ;;  %v4763_v50 = vrot.slane %v4750_v44, 4  ;;  %v4766_v11 = vsel %vm110_vm0, %v4750_v44, %v4765_v46  ;;  %v4777_v56 = vrot.slane %v4762_v47, 4  ;;  %4786 = vst.msk [vmem:[#allocation8 + $0x4] sm:$0x3] %vm4783_vm4, %v4762_v47 }
 0xda3   :  { %v4774_v6 = vperm.slane %v4766_v11, %v5275_v36 }
 0xda4   :  { %v4764_v60 = vsel %vm110_vm0, %v4763_v50, %v4740_v41  ;;  %v4775_v33 = vrot.slane %v4758_v48, 4  ;;  %v4778_v15 = vsel %vm110_vm0, 0.0, %v4777_v56  ;;  %4784 = vst.msk [vmem:[#allocation8] sm:$0x3] %vm4783_vm4, %v4758_v48 }
 0xda5   :  { %v4770_v13 = vperm.slane %v4764_v60, %v5275_v36  ;;  %v4781_v7 = vrot.slane %v4774_v6, 4  ;;  %4787 = vst.msk [vmem:[#allocation8 + $0x6] sm:$0x3] %vm4783_vm4, %v4778_v15 }
 0xda6   :  { %v4776_v49 = vsel %vm110_vm0, 0.0, %v4775_v33  ;;  %4790 = vst.msk [vmem:[#allocation8 + $0xc] sm:$0x3] %vm4783_vm4, %v4774_v6 }
 0xda7   :  { %v4779_v2 = vrot.slane %v4770_v13, 4  ;;  %v4782_v53 = vsel %vm110_vm0, 0.0, %v4781_v7  ;;  %4785 = vst.msk [vmem:[#allocation8 + $0x2] sm:$0x3] %vm4783_vm4, %v4776_v49 }
 0xda8   :  { %4788 = vst.msk [vmem:[#allocation8 + $0x8] sm:$0x3] %vm4783_vm4, %v4770_v13 }
 0xda9   :  { %v4780_v36 = vsel %vm110_vm0, 0.0, %v4779_v2  ;;  %4791 = vst.msk [vmem:[#allocation8 + $0xe] sm:$0x3] %vm4783_vm4, %v4782_v53 }
 0xdaa   :  { %4789 = vst.msk [vmem:[#allocation8 + $0xa] sm:$0x3] %vm4783_vm4, %v4780_v36 }
 0xdab   :  { %4804 = dma.vmem_to_hbm [thread:$0]  %s4797_s15, 256, %s4799_s27, [#allocation4], %s5130_s30, %s5130_s30, %s5131_s0  }
 0xdac   :  { %5127 = dma.done.wait [#allocation4], 256  }
 0xdad   :  { %5128 = vsyncadd [#allocation4], 4294967040 }
 0xdae   :  { %4809 = vsyncpa [#allocation3], 1 }
 0xdaf   :  { %4810 = vsyncpa [#allocation6], 1 }
 0xdb0   :  { %4811 = vsyncpa [#allocation4], 1 }

</bundles_post_ra>
